<compile_context>
chip_gen: v7x
topology: tpu7x:2x2x1
jax: 0.10.0
libtpu: 0.0.40
codegen_flags: <defaults>
</compile_context>

<pallas_src>
import jax
import jax.numpy as jnp
from jax.experimental import pallas as pl
from jax.experimental.pallas import tpu as pltpu

C_SE, C_MID, C_OUT = 56, 1344, 224
H = W = 14
HW = H * W

# Padded / tiled sizes (MXU & vreg friendly).
C_MID_PAD = 1536   # 1344 -> 12 * 128, divides evenly into TK blocks
HW_PAD = 256       # 196  -> 2 * 128, lane-dense output stores
TK = 512           # K-reduction tile: 3 grid steps over C_MID_PAD
BM = 112           # C_OUT split 224 -> 2 x 112 ("parallel" axis for v7x)


def se_fused_kernel(xse_ref, w1t_ref, b1_ref, w2_ref, x_ref, out_ref, acc_ref):
    k = pl.program_id(1)

    @pl.when(k == 0)
    def _():
        acc_ref[...] = jnp.zeros_like(acc_ref)

    # SE gate for this K block, lane-dense [1, TK], computed in f32.
    pre = jnp.dot(xse_ref[...], w1t_ref[...].astype(jnp.float32),
                  preferred_element_type=jnp.float32) + b1_ref[...]
    gate = jax.nn.sigmoid(pre)                                   # [1, TK] f32

    # Fold the per-channel gate into w2 columns, then one bf16 MXU matmul.
    gated_w2 = (w2_ref[...].astype(jnp.float32) * gate).astype(jnp.bfloat16)
    acc_ref[...] += jnp.dot(gated_w2, x_ref[...],
                            preferred_element_type=jnp.float32)  # [BM, HW_PAD]

    @pl.when(k == pl.num_programs(1) - 1)
    def _():
        out_ref[...] = acc_ref[...].astype(out_ref.dtype)


def se_block(x519, x522, w1, b1, w2):
    n, c_mid, h, w = x519.shape
    assert (n, c_mid, h, w) == (1, C_MID, H, W)
    assert x522.shape == (1, C_SE, 1, 1)

    # Channel-major 2D layouts, zero-padded; dominant operands in bf16.
    x_mat = jnp.zeros((C_MID_PAD, HW_PAD), jnp.float32)
    x_mat = x_mat.at[:C_MID, :HW].set(x519.reshape(C_MID, HW)).astype(jnp.bfloat16)

    w1t = jnp.zeros((C_SE, C_MID_PAD), jnp.float32)
    w1t = w1t.at[:, :C_MID].set(w1.T).astype(jnp.bfloat16)

    b1r = jnp.zeros((1, C_MID_PAD), jnp.float32)
    b1r = b1r.at[0, :C_MID].set(b1)

    w2p = jnp.zeros((C_OUT, C_MID_PAD), jnp.float32)
    w2p = w2p.at[:, :C_MID].set(w2).astype(jnp.bfloat16)

    xse = x522.reshape(1, C_SE).astype(jnp.float32)

    grid = (C_OUT // BM, C_MID_PAD // TK)   # (2, 3)

    out_mat = pl.pallas_call(
        se_fused_kernel,
        out_shape=jax.ShapeDtypeStruct((C_OUT, HW_PAD), jnp.float32),
        grid_spec=pltpu.PrefetchScalarGridSpec(
            num_scalar_prefetch=0,
            grid=grid,
            in_specs=[
                pl.BlockSpec((1, C_SE), lambda m, k: (0, 0)),     # x_se row
                pl.BlockSpec((C_SE, TK), lambda m, k: (0, k)),    # w1^T block
                pl.BlockSpec((1, TK), lambda m, k: (0, k)),       # bias row
                pl.BlockSpec((BM, TK), lambda m, k: (m, k)),      # w2 block
                pl.BlockSpec((TK, HW_PAD), lambda m, k: (k, 0)),  # x block
            ],
            out_specs=pl.BlockSpec((BM, HW_PAD), lambda m, k: (m, 0)),
            scratch_shapes=[pltpu.VMEM((BM, HW_PAD), jnp.float32)],
        ),
        compiler_params=pltpu.CompilerParams(
            dimension_semantics=("parallel", "arbitrary")),
    )(xse, w1t, b1r, w2p, x_mat)

    # Drop spatial padding, back to NCHW.
    return out_mat[:, :HW].reshape(1, C_OUT, H, W)


def reference(x519, x522, w1, b1, w2):
    s = jax.nn.sigmoid(
        jnp.einsum("oi,i->o", w1, x522.reshape(C_SE)) + b1)      # [1344]
    y = s[None, :, None, None] * x519                            # [1,1344,14,14]
    out = jnp.einsum("oi,nihw->nohw", w2, y)                     # [1,224,14,14]
    return out


if __name__ == "__main__":
    key = jax.random.PRNGKey(0)
    k1, k2, k3, k4, k5 = jax.random.split(key, 5)

    x519 = jax.random.normal(k1, (1, C_MID, H, W), dtype=jnp.float32)
    x522 = jax.random.normal(k2, (1, C_SE, 1, 1), dtype=jnp.float32)

    # Deterministic synthetic parameters (shapes from the module's __init__).
    w1 = jax.random.normal(k3, (C_MID, C_SE), dtype=jnp.float32) * (1.0 / (C_SE ** 0.5))
    b1 = jax.random.normal(k4, (C_MID,), dtype=jnp.float32) * 0.01
    w2 = jax.random.normal(k5, (C_OUT, C_MID), dtype=jnp.float32) * (1.0 / (C_MID ** 0.5))

    out = jax.block_until_ready(se_block(x519, x522, w1, b1, w2))

    ref = reference(x519, x522, w1, b1, w2)
    assert out.shape == (1, C_OUT, H, W)
    # bf16 operands on the MXU -> looser tolerance vs the pure-f32 reference.
    assert jnp.allclose(out, ref, rtol=5e-2, atol=5e-2), "mismatch vs reference"

    print("KERNEL_OK")
</pallas_src>

<mosaic_0001>
module attributes {stable_mosaic.version = 11 : i64} {
  func.func @se_fused_kernel(%arg0: i32, %arg1: i32, %arg2: memref<1x56xf32, #tpu.memory_space<vmem>>, %arg3: memref<56x512xbf16, #tpu.memory_space<vmem>>, %arg4: memref<1x512xf32, #tpu.memory_space<vmem>>, %arg5: memref<112x512xbf16, #tpu.memory_space<vmem>>, %arg6: memref<512x256xbf16, #tpu.memory_space<vmem>>, %arg7: memref<112x256xf32, #tpu.memory_space<vmem>>, %arg8: memref<112x256xf32, #tpu.memory_space<vmem>>) attributes {dimension_semantics = [#tpu.dimension_semantics<parallel>, #tpu.dimension_semantics<arbitrary>], iteration_bounds = array<i64: 2, 3>, scalar_prefetch = 0 : i64, scratch_operands = 1 : i64, tpu.core_type = #tpu.core_type<tc>, window_params = [{pipeline_mode = #tpu.pipeline_mode<synchronous>, transform_indices = @transform_0, window_bounds = array<i64: 1, 56>}, {transform_indices = @transform_1, window_bounds = array<i64: 56, 512>}, {transform_indices = @transform_2, window_bounds = array<i64: 1, 512>}, {transform_indices = @transform_3, window_bounds = array<i64: 112, 512>}, {transform_indices = @transform_4, window_bounds = array<i64: 512, 256>}, {transform_indices = @transform_5, window_bounds = array<i64: 112, 256>}]} {
    %c0_i32 = arith.constant 0 : i32
    %0 = arith.cmpi eq, %arg1, %c0_i32 : i32
    %1 = arith.extui %0 : i1 to i32
    %c0_i32_0 = arith.constant 0 : i32
    %2 = arith.cmpi ne, %1, %c0_i32_0 : i32
    scf.if %2 {
      %cst_17 = arith.constant 0.000000e+00 : f32
      %27 = vector.broadcast %cst_17 : f32 to vector<112x256xf32>
      %c0_18 = arith.constant 0 : index
      %c0_19 = arith.constant 0 : index
      %28 = vector.load %arg8[%c0_18, %c0_19] : memref<112x256xf32, #tpu.memory_space<vmem>>, vector<112x256xf32>
      tpu.vector_store %arg8[%c0_18, %c0_19], %27 {strides = array<i32>} : memref<112x256xf32, #tpu.memory_space<vmem>>, vector<112x256xf32>,
    } else {
    }
    %c0 = arith.constant 0 : index
    %c0_1 = arith.constant 0 : index
    %3 = vector.load %arg2[%c0, %c0_1] : memref<1x56xf32, #tpu.memory_space<vmem>>, vector<1x56xf32>
    %c0_2 = arith.constant 0 : index
    %c0_3 = arith.constant 0 : index
    %4 = vector.load %arg3[%c0_2, %c0_3] : memref<56x512xbf16, #tpu.memory_space<vmem>>, vector<56x512xbf16>
    %5 = arith.extf %4 : vector<56x512xbf16> to vector<56x512xf32>
    %cst = arith.constant dense<0.000000e+00> : vector<1x512xf32>
    %6 = tpu.matmul %3, %5, %cst {dimension_numbers = #tpu.dot_dimension_numbers<[1], [0], [0], [1], [0, 0, 1, 1], [], []>} : vector<1x56xf32>, vector<56x512xf32>, vector<1x512xf32> -> vector<1x512xf32>
    %c0_4 = arith.constant 0 : index
    %c0_5 = arith.constant 0 : index
    %7 = vector.load %arg4[%c0_4, %c0_5] : memref<1x512xf32, #tpu.memory_space<vmem>>, vector<1x512xf32>
    %8 = arith.addf %6, %7 : vector<1x512xf32>
    %9 = arith.negf %8 : vector<1x512xf32>
    %10 = math.exp %9 : vector<1x512xf32>
    %cst_6 = arith.constant 1.000000e+00 : f32
    %11 = vector.broadcast %cst_6 : f32 to vector<1x512xf32>
    %12 = arith.addf %11, %10 : vector<1x512xf32>
    %13 = arith.divf %11, %12 : vector<1x512xf32>
    %c0_7 = arith.constant 0 : index
    %c0_8 = arith.constant 0 : index
    %14 = vector.load %arg5[%c0_7, %c0_8] : memref<112x512xbf16, #tpu.memory_space<vmem>>, vector<112x512xbf16>
    %15 = arith.extf %14 : vector<112x512xbf16> to vector<112x512xf32>
    %16 = vector.broadcast %13 : vector<1x512xf32> to vector<112x512xf32>
    %17 = arith.mulf %15, %16 : vector<112x512xf32>
    %18 = arith.truncf %17 : vector<112x512xf32> to vector<112x512xbf16>
    %c0_9 = arith.constant 0 : index
    %c0_10 = arith.constant 0 : index
    %19 = vector.load %arg8[%c0_9, %c0_10] : memref<112x256xf32, #tpu.memory_space<vmem>>, vector<112x256xf32>
    %c0_11 = arith.constant 0 : index
    %c0_12 = arith.constant 0 : index
    %20 = vector.load %arg6[%c0_11, %c0_12] : memref<512x256xbf16, #tpu.memory_space<vmem>>, vector<512x256xbf16>
    %cst_13 = arith.constant dense<0.000000e+00> : vector<112x256xf32>
    %21 = tpu.matmul %18, %20, %cst_13 {dimension_numbers = #tpu.dot_dimension_numbers<[1], [0], [0], [1], [0, 0, 1, 1], [], []>} : vector<112x512xbf16>, vector<512x256xbf16>, vector<112x256xf32> -> vector<112x256xf32>
    %22 = arith.addf %19, %21 : vector<112x256xf32>
    %c0_14 = arith.constant 0 : index
    %c0_15 = arith.constant 0 : index
    %23 = vector.load %arg8[%c0_14, %c0_15] : memref<112x256xf32, #tpu.memory_space<vmem>>, vector<112x256xf32>
    tpu.vector_store %arg8[%c0_14, %c0_15], %22 {strides = array<i32>} : memref<112x256xf32, #tpu.memory_space<vmem>>, vector<112x256xf32>,
    %c2_i32 = arith.constant 2 : i32
    %24 = arith.cmpi eq, %arg1, %c2_i32 : i32
    %25 = arith.extui %24 : i1 to i32
    %c0_i32_16 = arith.constant 0 : i32
    %26 = arith.cmpi ne, %25, %c0_i32_16 : i32
    scf.if %26 {
      %c0_17 = arith.constant 0 : index
      %c0_18 = arith.constant 0 : index
      %27 = vector.load %arg8[%c0_17, %c0_18] : memref<112x256xf32, #tpu.memory_space<vmem>>, vector<112x256xf32>
      %c0_19 = arith.constant 0 : index
      %c0_20 = arith.constant 0 : index
      %28 = vector.load %arg7[%c0_19, %c0_20] : memref<112x256xf32, #tpu.memory_space<vmem>>, vector<112x256xf32>
      tpu.vector_store %arg7[%c0_19, %c0_20], %27 {strides = array<i32>} : memref<112x256xf32, #tpu.memory_space<vmem>>, vector<112x256xf32>,
    } else {
    }
    return
  }
  func.func @transform_0(%arg0: i32, %arg1: i32) -> (i32, i32) {
    %c0_i32 = arith.constant 0 : i32
    %c0_i32_0 = arith.constant 0 : i32
    %c0_i32_1 = arith.constant 0 : i32
    return %c0_i32, %c0_i32_0 : i32, i32
  }
  func.func @transform_1(%arg0: i32, %arg1: i32) -> (i32, i32) {
    %c0_i32 = arith.constant 0 : i32
    %c0_i32_0 = arith.constant 0 : i32
    return %c0_i32, %arg1 : i32, i32
  }
  func.func @transform_2(%arg0: i32, %arg1: i32) -> (i32, i32) {
    %c0_i32 = arith.constant 0 : i32
    %c0_i32_0 = arith.constant 0 : i32
    return %c0_i32, %arg1 : i32, i32
  }
  func.func @transform_3(%arg0: i32, %arg1: i32) -> (i32, i32) {
    %c0_i32 = arith.constant 0 : i32
    return %arg0, %arg1 : i32, i32
  }
  func.func @transform_4(%arg0: i32, %arg1: i32) -> (i32, i32) {
    %c0_i32 = arith.constant 0 : i32
    %c0_i32_0 = arith.constant 0 : i32
    return %arg1, %c0_i32 : i32, i32
  }
  func.func @transform_5(%arg0: i32, %arg1: i32) -> (i32, i32) {
    %c0_i32 = arith.constant 0 : i32
    %c0_i32_0 = arith.constant 0 : i32
    return %arg0, %c0_i32 : i32, i32
  }
}

</mosaic_0001>

<bundles_post_ra>
// kernel: tpu_custom_call.1
= control target key start
LH: loop header
LB: loop body
LE: loop exit
PB: predicated region body
PF: predicated region fallthrough
CT: control target
= control target key end

     0   :  { %s3257_s0 = inlined_call_operand.hbm [shape: f32[1,56], index: 0, kind: input, shape index: {}]   ;;  %s3258_s1 = inlined_call_operand.hbm [shape: bf16[56,1536], index: 1, kind: input, shape index: {}]   ;;  %s3259_s2 = inlined_call_operand.hbm [shape: f32[1,1536], index: 2, kind: input, shape index: {}]   ;;  %s3260_s3 = inlined_call_operand.hbm [shape: bf16[224,1536], index: 3, kind: input, shape index: {}]   ;;  %s3261_s4 = inlined_call_operand.hbm [shape: bf16[1536,256], index: 4, kind: input, shape index: {}]   ;;  %s3262_s5 = inlined_call_operand.hbm [shape: f32[224,256], index: 5, kind: output, shape index: {}]  }
   0x1   :  { %3291 = sst [smem:[#allocation32_spill]] %s3258_s1 }
   0x2   :  { %3292 = sst [smem:[#allocation33_spill]] %s3260_s3 }
   0x3   :  { %3293 = sst [smem:[#allocation34_spill]] %s3261_s4 }
   0x4   :  { %3294 = sst [smem:[#allocation35_spill]] %s3262_s5 }
   0x5   :  { %10 = vsyncpa [#allocation4], 0 }
   0x6   :  { %11 = vsyncpa [#allocation7], 0 }
   0x7   :  { %13 = vsyncpa [#allocation7 + $0x1], 0 }
   0x8   :  { %14 = vsyncpa [#allocation10], 0 }
   0x9   :  { %16 = vsyncpa [#allocation10 + $0x1], 0 }
   0xa   :  { %17 = vsyncpa [#allocation5], 0 }
   0xb   :  { %19 = vsyncpa [#allocation5 + $0x1], 0  ;;  %s2572_s18 = smov 0   ;;  %s2574_s19 = smov 0  }
   0xc   :  { %s2576_s20 = smov 0   ;;  %s2578_s21 = smov 0  }
   0xd   :  { %s2580_s22 = smov 0   ;;  %s2582_s23 = smov 0  }
   0xe   :  { %s2584_s24 = smov 0   ;;  %s2586_s25 = smov 0  }
   0xf   :  { %s2588_s26 = smov 0   ;;  %s2590_s27 = smov 0  }
  0x10   :  { %s2592_s28 = smov 0   ;;  %s2594_s29 = smov 0  }
  0x11   :  { %s2596_s30 = smov 0   ;;  %s2598_s6 = smov 0  }
  0x12 LB: > { %3295 = sst [smem:[#allocation18_spill]] %s2481_s20  ;;  %s34_s7 = sadd.s32 1, %s2517_s29  ;;  %s2525_s6 = sphi %s2598_s6, %s25_s6   ;;  %s2521_s30 = sphi %s2596_s30, %s3357_s30   ;;  %s2517_s29 = sphi %s2594_s29, %s3366_s29   ;;  %s2513_s28 = sphi %s2592_s28, %s3355_s28   ;;  %s2509_s27 = sphi %s2590_s27, %s3365_s27   ;;  %s2505_s26 = sphi %s2588_s26, %s3354_s26   ;;  %s2501_s25 = sphi %s2586_s25, %s3364_s25   ;;  %s2497_s24 = sphi %s2584_s24, %s3363_s24   ;;  %s2493_s23 = sphi %s2582_s23, %s3362_s23   ;;  %s2489_s22 = sphi %s2580_s22, %s3361_s22   ;;  %s2485_s21 = sphi %s2578_s21, %s3360_s21   ;;  %s2481_s20 = sphi %s2576_s20, %s3350_s20   ;;  %s2477_s19 = sphi %s2574_s19, %s3359_s19   ;;  %s2473_s18 = sphi %s2572_s18, %s3358_s18  }
  0x13   : > { %3296 = sst [smem:[#allocation19_spill]] %s2493_s23  ;;  %s65_s8 = sadd.s32 1, %s2505_s26 }
  0x14   : > { %3297 = sst [smem:[#allocation20_spill]] %s2505_s26  ;;  %p2644_p0 = scmp.ge.s32.totalorder %s34_s7, 3 }
  0x15   : > { %3298 = sst [smem:[#allocation21_spill]] %s2509_s27  ;;  %p72_p1 = scmp.ne.s32.totalorder %s2505_s26, %s2501_s25 }
  0x16   : > { %3299 = sst [smem:[#allocation22_spill]] %s2513_s28  ;;  %p3267_p2 = scmp.eq.s32.totalorder %s2525_s6, 0 }
  0x17   : > { %3300 = sst [smem:[#allocation23_spill]] %s2521_s30  ;;  %s3368_s7 = smov (%p2644_p0, %s34_s7), 0 }
  0x18   : > { %s3301_s9 = scalar_select %p2644_p0, 1, 0 }
  0x19   : > { %3302 = sst [smem:[#allocation24_spill]] %s3368_s7  ;;  %p74_p3 = por %p3267_p2, %p72_p1 }
  0x1a   : > { %p3266_p4 = scmp.lt.s32.totalorder %s2525_s6, 6  ;;  %s2660_s10 = ssub.s32 %s2517_s29, %s3368_s7 }
  0x1b   : > { %p63_p5 = scmp.eq.s32.totalorder %s2660_s10, 0  ;;  %s2665_s12 = sand.u32 1, %s2505_s26  }
  0x1c   : > { %s1850_s13 = sshll.u32 %s2517_s29, 8  ;;  %s1921_s15 = smul.u32 112, %s2665_s12 }
  0x1d   : > { %s2669_s14 = scalar_select %p63_p5, %s2505_s26, %s65_s8  }
  0x1e   : > { %s3304_s1 = sld [smem:[#allocation32_spill]]  ;;  %p2679_p6 = pnand %p3266_p4, %p74_p3 }
  0x1f   : > { %3303 = sst [smem:[#allocation25_spill]] %s2669_s14  ;;  %s223_s7 = scalar_lea.vmem [#allocation6], %s1921_s15 }
  0x20   : > { %s3305_s11 = scalar_select %p2679_p6, 1, 0 }
  0x21   : > { %s230_s28 = sshll.u32 %s223_s7, 4  ;;  %s3307_s8 = sand.u32 1, %s2525_s6   ;;  %s2683_s28 = int_to_ptr.vmem [resolvable:$true] %s230_s28 }
  0x22   : > { %3306 = sst [smem:[#allocation26_spill]] %s3305_s11  ;;  %s2687_s14 = scalar_lea.sflag [#allocation7], %s3307_s8 }
  0x23   : > { %3308 = sst [smem:[#allocation27_spill]] %s2687_s14  ;;  %p2693_p8 = pneg %p2679_p6 }
  0x24   : > { %s2675_s5 = scalar_lea.hbm %s3304_s1, %s1850_s13  ;;  %s2224_s7 = scalar_lea.hbm %s3304_s1, 5376 }
  0x25   : > { %s2219_s16 = scalar_lea.hbm %s2675_s5, 1792  ;;  %p2225_p11 = scmp.lt.u32.totalorder %s2675_s5, %s3304_s1 }
  0x26   : > { %p2220_p7 = scmp.ne.s32.totalorder %s2675_s5, %s2219_s16  ;;  %p2226_p12 = scmp.lt.u32.totalorder %s2224_s7, %s2219_s16 }
  0x27   : > { %s3309_s13 = scalar_select %p2693_p8, 1, 0 }
  0x28   : > { %p2222_p9 = pnand %p2693_p8, %p2220_p7  ;;  %p2227_p13 = por %p2226_p12, %p2225_p11 }
  0x29   : > { %3310 = sst [smem:[#allocation28_spill]] %s3309_s13  ;;  %p2228_p1 = scmp.lt.u32.totalorder %s2219_s16, %s2675_s5 }
  0x2a   : > { %p2223_p10 = pneg %p2222_p9 }
  0x2b   : > { %p2229_p3 = por %p2228_p1, %p2227_p13 }
  0x2d   : > { %p2230_p5 = pnand %p2229_p3, %p2223_p10 }
  0x2f   : > { %2233 = shalt.err (!%p2230_p5)
}
  0x30   : > { %s2234_s8 = scalar_lea.vmem %s2683_s28, 1792  ;;  %s2527_s26 = smov [#allocation6]  }
  0x31   : > { %p2235_p7 = scmp.ne.s32.totalorder %s2683_s28, %s2234_s8  ;;  %s2239_s17 = sshll.u32 %s2527_s26, 4  ;;  %s2240_s17 = int_to_ptr.vmem [resolvable:$false] %s2239_s17 }
  0x32   : > { %s2241_s27 = scalar_lea.vmem %s2240_s17, 3584  ;;  %p2242_p2 = scmp.lt.s32.totalorder %s2683_s28, %s2240_s17 }
  0x33   : > { %p2237_p9 = pnand %p2235_p7, %p2693_p8  ;;  %p2243_p0 = scmp.lt.s32.totalorder %s2241_s27, %s2234_s8 }
  0x35   : > { %p2238_p4 = pneg %p2237_p9  ;;  %p2244_p11 = por %p2243_p0, %p2242_p2 }
  0x37   : > { %p2245_p12 = pnand %p2244_p11, %p2238_p4 }
  0x39   : > { %2248 = shalt.err (!%p2245_p12)
}
  0x3a   : > { %s3269_s16 = smov 768   ;;  %s3270_s7 = smov 256  }
  0x3b   : > { %s3271_s15 = smov 16   ;;  %s37_s8 = sadd.s32 1, %s2521_s30 }
  0x3c   : > { %1948 = dma.hbm_to_vmem [thread:$0]  (!%p2679_p6), %s2675_s5, 1792, %s2683_s28, %s2687_s14, %s3269_s16, %s3270_s7, %s3271_s15  }
  0x3d   : > { %s119_s26 = sadd.s32 1, %s2493_s23  ;;  %p3311_p0 = scmp.ne.s32.totalorder %s3301_s9, 0 }
  0x3e   : > { %p126_p2 = scmp.ne.s32.totalorder %s2493_s23, %s2489_s22  ;;  %s261_s17 = sand.u32 1, %s2493_s23  }
  0x3f   : > { %s3370_s8 = smov (!%p3311_p0, %s37_s8), %s2521_s30  ;;  %p3312_p10 = scmp.eq.s32.totalorder %s2525_s6, 0 }
  0x40   : > { %p39_p4 = scmp.ge.s32.totalorder %s3370_s8, 2  ;;  %s1922_s1 = smul.u32 224, %s261_s17 }
  0x41   : > { %p2730_p13 = por %p126_p2, %p3312_p10  ;;  %s1764_s28 = sshll.u32 %s2517_s29, 2 }
  0x42   : > { %s3372_s8 = smov (%p39_p4, %s3370_s8), 0  ;;  %s1964_s16 = smul.u32 168, %s2521_s30 }
  0x43   : > { %3314 = sst [smem:[#allocation29_spill]] %s3372_s8  ;;  %s2738_s5 = ssub.s32 %s2521_s30, %s3372_s8 }
  0x44   : > { %s116_s9 = sor.u32 %s2738_s5, %s2660_s10  ;;  %s263_s7 = scalar_lea.vmem [#allocation9], %s1922_s1 }
  0x45   : > { %p117_p1 = scmp.eq.s32.totalorder %s116_s9, 0  ;;  %s273_s15 = sshll.u32 %s263_s7, 4  ;;  %s2744_s15 = int_to_ptr.vmem [resolvable:$true] %s273_s15 }
  0x46   : > { %s270_s4 = sadd.s32 %s1964_s16, %s1764_s28  ;;  %p3316_p3 = scmp.lt.s32.totalorder %s2525_s6, 6 }
  0x47   : > { %s2747_s14 = scalar_select %p117_p1, %s2493_s23, %s119_s26  }
  0x48   : > { %s1765_s11 = sshll.u32 %s270_s4, 6  ;;  %p2753_p5 = pnand %p3316_p3, %p2730_p13 }
  0x49   : > { %3315 = sst [smem:[#allocation30_spill]] %s2747_s14  ;;  %s3318_s3 = sld [smem:[#allocation33_spill]] }
  0x4a   : > { %s3319_s1 = sand.u32 1, %s2525_s6   ;;  %p2251_p9 = pneg %p2753_p5 }
  0x4b   : > { %s2764_s16 = scalar_lea.sflag [#allocation10], %s3319_s1 }
  0x4f   : > { %s2760_s10 = scalar_lea.hbm %s3318_s3, %s1765_s11  ;;  %s2254_s11 = scalar_lea.hbm %s3318_s3, 21504 }
  0x50   : > { %s2249_s4 = scalar_lea.hbm %s2760_s10, 3584  ;;  %p2255_p0 = scmp.lt.u32.totalorder %s2760_s10, %s3318_s3 }
  0x51   : > { %p2250_p7 = scmp.ne.s32.totalorder %s2760_s10, %s2249_s4  ;;  %p2256_p2 = scmp.lt.u32.totalorder %s2254_s11, %s2249_s4 }
  0x52   : > { %p2258_p10 = scmp.lt.u32.totalorder %s2249_s4, %s2760_s10 }
  0x53   : > { %p2252_p11 = pnand %p2251_p9, %p2250_p7  ;;  %p2257_p4 = por %p2256_p2, %p2255_p0 }
  0x55   : > { %p2253_p12 = pneg %p2252_p11  ;;  %p2259_p13 = por %p2258_p10, %p2257_p4 }
  0x57   : > { %p2260_p1 = pnand %p2259_p13, %p2253_p12 }
  0x59   : > { %2263 = shalt.err (!%p2260_p1)
}
  0x5a   : > { %s2264_s27 = scalar_lea.vmem %s2744_s15, 3584  ;;  %s2531_s28 = smov [#allocation9]  }
  0x5b   : > { %p2265_p3 = scmp.ne.s32.totalorder %s2744_s15, %s2264_s27  ;;  %s2269_s9 = sshll.u32 %s2531_s28, 4  ;;  %s2270_s9 = int_to_ptr.vmem [resolvable:$false] %s2269_s9 }
  0x5c   : > { %s2271_s1 = scalar_lea.vmem %s2270_s9, 7168  ;;  %p2272_p6 = scmp.lt.s32.totalorder %s2744_s15, %s2270_s9 }
  0x5d   : > { %p2267_p7 = pnand %p2265_p3, %p2251_p9  ;;  %p2273_p0 = scmp.lt.s32.totalorder %s2271_s1, %s2264_s27 }
  0x5f   : > { %p2268_p11 = pneg %p2267_p7  ;;  %p2274_p2 = por %p2273_p0, %p2272_p6 }
  0x61   : > { %p2275_p4 = pnand %p2274_p2, %p2268_p11 }
  0x63   : > { %2278 = shalt.err (!%p2275_p4)
}
  0x64   : > { %s3320_s4 = smov 16   ;;  %s3321_s13 = smov 256  }
  0x65   : > { %s3322_s7 = smov 768   ;;  %s2796_s17 = sadd.s32 4294967295, %s2525_s6  }
  0x66   : > { %1954 = dma.hbm_to_vmem [thread:$0]  (!%p2753_p5), %s2760_s10, 3584, %s2744_s15, %s2764_s16, %s3322_s7, %s3321_s13, %s3320_s4  }
  0x67   : > { %s1755_s11 = sadd.s32 4294967294, %s2525_s6   ;;  %p78_p6 = scmp.ne.s32.totalorder %s2501_s25, %s2497_s24 }
  0x68   : > { %p3284_p9 = scmp.eq.s32.totalorder %s2796_s17, 0  ;;  %p132_p12 = scmp.ne.s32.totalorder %s2489_s22, %s2485_s21 }
  0x69   : > { %p169_p10 = scmp.eq.s32.totalorder %s2738_s5, 0  ;;  %s171_s26 = sadd.s32 1, %s2481_s20 }
  0x6a   : > { %p2807_p13 = por %p3284_p9, %p78_p6  ;;  %p2814_p5 = por %p132_p12, %p3284_p9 }
  0x6b   : > { %p181_p1 = scmp.ne.s32.totalorder %s2481_s20, %s2477_s19  ;;  %p182_p3 = scmp.eq.s32.totalorder %s2796_s17, 5 }
  0x6c   : > { %s3323_s8 = scalar_select %p2807_p13, 1, 0 }
  0x6d   : > { %s3324_s15 = scalar_select %p2814_p5, 1, 0 }
  0x6e   : > { %s2821_s10 = scalar_select %p169_p10, %s2481_s20, %s171_s26  }
  0x6f   : > { %p187_p7 = scmp.ne.s32.totalorder %s2477_s19, %s2473_s18  ;;  %p188_p11 = scmp.eq.s32.totalorder %s1755_s11, 5 }
  0x70   : > { %3325 = sst [smem:[#allocation31_spill]] %s2821_s10  ;;  %p1756_p0 = scmp.ge.s32.totalorder %s2525_s6, 1 }
  0x71   : > { %p2827_p2 = por %p182_p3, %p181_p1  ;;  %p195_p4 = scmp.lt.s32.totalorder %s2525_s6, 7 }
  0x72   : > { %p2832_p6 = por %p188_p11, %p187_p7  ;;  %s2532_s27 = smov [#allocation3]  }
  0x73   : > { %s3326_s21 = scalar_select %p2827_p2, 1, 0 }
  0x74   : > { %s3327_s24 = scalar_select %p2832_p6, 1, 0 }
  0x75   : > { %p2836_p12 = pnand %p1756_p0, %p195_p4  ;;  %s208_s28 = sshll.u32 %s2532_s27, 4  ;;  %s209_s28 = int_to_ptr.vmem [resolvable:$true] %s208_s28 }
  0x76   : > { %s1761_s9 = sshll.u32 %s2665_s12, 2  ;;  %s1851_s1 = sshll.u32 %s2517_s29, 6 }
  0x77   : > { %s3328_s5 = scalar_select %p2836_p12, 1, 0 }
  0x78   : > { %p1941_p10 = pneg %p2836_p12  ;;  %s2853_s11 = scalar_lea.hbm %s3259_s2, %s1851_s1 }
  0x79   : > { %s244_s26 = scalar_lea.vmem [#allocation8], %s1761_s9  ;;  %s1766_s30 = sshll.u32 %s2665_s12, 9 }
  0x7a   : > { %p2846_p1 = pnand %p1941_p10, %p3284_p9  ;;  %s252_s3 = sshll.u32 %s244_s26, 4  ;;  %s2856_s3 = int_to_ptr.vmem [resolvable:$true] %s252_s3 }
  0x7b   : > { %s2279_s23 = scalar_lea.hbm %s3257_s0, 16 }
  0x7c   : > { %p2280_p3 = scmp.ne.s32.totalorder %s3257_s0, %s2279_s23  ;;  %p2281_p7 = pneg %p2846_p1 }
  0x7d   : > { %p2286_p4 = scmp.lt.u32.totalorder %s2279_s23, %s3257_s0 }
  0x7e   : > { %p2282_p11 = pnand %p2281_p7, %p2280_p3 }
  0x80   : > { %p2283_p0 = pneg %p2282_p11 }
  0x82   : > { %p2288_p10 = pnand %p2286_p4, %p2283_p0 }
  0x84   : > { %2291 = shalt.err (!%p2288_p10)
}
  0x85   : > { %s2292_s9 = scalar_lea.vmem %s209_s28, 16  ;;  %s2299_s14 = scalar_lea.vmem %s209_s28, 32 }
  0x86   : > { %p2293_p9 = scmp.ne.s32.totalorder %s209_s28, %s2292_s9  ;;  %p2300_p5 = scmp.lt.s32.totalorder %s209_s28, %s209_s28 }
  0x87   : > { %p2301_p13 = scmp.lt.s32.totalorder %s2299_s14, %s2292_s9 }
  0x88   : > { %p2295_p6 = pnand %p2293_p9, %p2281_p7 }
  0x89   : > { %p2302_p12 = por %p2301_p13, %p2300_p5 }
  0x8a   : > { %p2296_p2 = pneg %p2295_p6 }
  0x8c   : > { %p2303_p8 = pnand %p2302_p12, %p2296_p2 }
  0x8e   : > { %2306 = shalt.err (!%p2303_p8)
}
  0x8f   : > { %s3330_s23 = sld [smem:[#allocation28_spill]]  ;;  %s2307_s7 = scalar_lea.hbm %s2853_s11, 64 }
  0x90   : > { %1944 = dma.hbm_to_vmem [thread:$0]  (!%p2846_p1), %s3257_s0, 16, %s209_s28, [#allocation4]  }
  0x91   : > { %p2308_p9 = scmp.ne.s32.totalorder %s2853_s11, %s2307_s7  ;;  %s2312_s13 = scalar_lea.hbm %s3259_s2, 192 }
  0x92   : > { %p2313_p8 = scmp.lt.u32.totalorder %s2853_s11, %s3259_s2  ;;  %p2314_p13 = scmp.lt.u32.totalorder %s2312_s13, %s2307_s7 }
  0x93   : > { %p2316_p2 = scmp.lt.u32.totalorder %s2307_s7, %s2853_s11 }
  0x94   : > { %p2315_p5 = por %p2314_p13, %p2313_p8 }
  0x95   : > { %p3331_p6 = scmp.ne.s32.totalorder %s3330_s23, 0 }
  0x96   : > { %p2317_p12 = por %p2316_p2, %p2315_p5 }
  0x97   : > { %p2310_p3 = pnand %p2308_p9, %p3331_p6 }
  0x99   : > { %p2311_p7 = pneg %p2310_p3 }
  0x9b   : > { %p2318_p11 = pnand %p2317_p12, %p2311_p7 }
  0x9d   : > { %2321 = shalt.err (!%p2318_p11)
}
  0x9e   : > { %s2322_s28 = scalar_lea.vmem %s2856_s3, 64  ;;  %s2533_s9 = smov [#allocation8]  }
  0x9f   : > { %p2323_p1 = scmp.ne.s32.totalorder %s2856_s3, %s2322_s28  ;;  %s2327_s14 = sshll.u32 %s2533_s9, 4  ;;  %s2328_s14 = int_to_ptr.vmem [resolvable:$false] %s2327_s14 }
  0xa0   : > { %s2329_s20 = scalar_lea.vmem %s2328_s14, 128  ;;  %p2330_p10 = scmp.lt.s32.totalorder %s2856_s3, %s2328_s14 }
  0xa1   : > { %p2325_p0 = pnand %p2323_p1, %p3331_p6  ;;  %p2331_p9 = scmp.lt.s32.totalorder %s2329_s20, %s2322_s28 }
  0xa3   : > { %p2326_p4 = pneg %p2325_p0  ;;  %p2332_p3 = por %p2331_p9, %p2330_p10 }
  0xa5   : > { %p2333_p8 = pnand %p2332_p3, %p2326_p4 }
  0xa7   : > { %2336 = shalt.err (!%p2333_p8)
}
  0xa8   : > { %s3332_s10 = sld [smem:[#allocation26_spill]]  ;;  %s3334_s7 = sld [smem:[#allocation27_spill]] }
  0xa9   : > { %s1853_s26 = sshll.u32 %s2517_s29, 13  ;;  %s3335_s1 = sld [smem:[#allocation34_spill]] }
  0xaa   : > { %s287_s28 = scalar_lea.vmem [#allocation11], %s1766_s30 }
  0xab   : > { %s295_s9 = sshll.u32 %s287_s28, 4  ;;  %s2904_s9 = int_to_ptr.vmem [resolvable:$true] %s295_s9 }
  0xae   : > { %p3333_p7 = scmp.ne.s32.totalorder %s3332_s10, 0 }
  0xaf   : > { %s2900_s4 = scalar_lea.hbm %s3335_s1, %s1853_s26  ;;  %s2342_s20 = scalar_lea.hbm %s3335_s1, 24576 }
  0xb0   : > { %1951 = dma.hbm_to_vmem [thread:$0]  (!%p3333_p7), %s2853_s11, 64, %s2856_s3, %s3334_s7  }
  0xb1   : > { %s2337_s14 = scalar_lea.hbm %s2900_s4, 8192  ;;  %p2343_p12 = scmp.lt.u32.totalorder %s2900_s4, %s3335_s1 }
  0xb2   : > { %p2338_p13 = scmp.ne.s32.totalorder %s2900_s4, %s2337_s14  ;;  %p2344_p11 = scmp.lt.u32.totalorder %s2342_s20, %s2337_s14 }
  0xb3   : > { %p2346_p0 = scmp.lt.u32.totalorder %s2337_s14, %s2900_s4 }
  0xb4   : > { %p2340_p5 = pnand %p2338_p13, %p3331_p6  ;;  %p2345_p1 = por %p2344_p11, %p2343_p12 }
  0xb6   : > { %p2341_p2 = pneg %p2340_p5  ;;  %p2347_p4 = por %p2346_p0, %p2345_p1 }
  0xb8   : > { %p2348_p10 = pnand %p2347_p4, %p2341_p2 }
  0xba   : > { %2351 = shalt.err (!%p2348_p10)
}
  0xbb   : > { %s2352_s30 = scalar_lea.vmem %s2904_s9, 8192  ;;  %s2534_s12 = smov [#allocation11]  }
  0xbc   : > { %p2353_p9 = scmp.ne.s32.totalorder %s2904_s9, %s2352_s30  ;;  %s2357_s27 = sshll.u32 %s2534_s12, 4  ;;  %s2358_s27 = int_to_ptr.vmem [resolvable:$false] %s2357_s27 }
  0xbd   : > { %s2359_s13 = scalar_lea.vmem %s2358_s27, 16384  ;;  %p2360_p13 = scmp.lt.s32.totalorder %s2904_s9, %s2358_s27 }
  0xbe   : > { %p2355_p3 = pnand %p2353_p9, %p3331_p6  ;;  %p2361_p5 = scmp.lt.s32.totalorder %s2359_s13, %s2352_s30 }
  0xc0   : > { %p2356_p8 = pneg %p2355_p3  ;;  %p2362_p12 = por %p2361_p5, %p2360_p13 }
  0xc2   : > { %p2363_p11 = pnand %p2362_p12, %p2356_p8 }
  0xc4   : > { %2366 = shalt.err (!%p2363_p11)
}
  0xc5   : > { %s2535_s28 = smov 128   ;;  %s2536_s14 = smov 8  }
  0xc6   : > { %1957 = dma.hbm_to_vmem [thread:$0]  (!%p3333_p7), %s2900_s4, 8192, %s2904_s9, %s2764_s16, %s2535_s28, %s2535_s28, %s2536_s14  }
  0xc7   : > { %p3336_p6 = scmp.ne.s32.totalorder %s3328_s5, 0 }
  0xc8   : > { %p3337_p2 = scmp.eq.s32.totalorder (!%p3336_p6), %s2796_s17, 0 }
  0xc9   : > { %307 = sbr.rel (%p3336_p6) target bundleno = 814 (0x32e), region = 40 }
  0xd0   : > { %2452 = dma.done.wait (%p3337_p2), [#allocation4], 16   ;;  %p3338_p1 = pmov %p3337_p2 }
  0xd1   : > { %s313_s23 = sand.u32 1, %s2796_s17   ;;  %s315_s3 = sand.u32 1, %s2501_s25  }
  0xd2   : > { %2454 = vsyncadd (%p3338_p1), [#allocation4], 4294967280  ;;  %s1924_s11 = smul.u32 112, %s315_s3  ;;  %s314_s20 = scalar_lea.sflag [#allocation7], %s313_s23 }
  0xd3   : > { %p3339_p0 = scmp.ne.s32.totalorder %s3323_s8, 0 }
  0xd4   : > { %s2936_s7 = scalar_lea.vmem [#allocation6], %s1924_s11 }
  0xd5   : > { %2456 = dma.done.wait (%p3339_p0), %s314_s20, 1856  }
  0xd6   : > { %2458 = vsyncadd (%p3339_p0), %s314_s20, 4294965440  ;;  %s1772_s16 = sshll.u32 %s315_s3, 2  ;;  %s333_s5 = sand.u32 1, %s2489_s22  }
  0xd7   : > { %s1925_s10 = smul.u32 224, %s333_s5  ;;  %s2943_s4 = scalar_lea.vmem [#allocation8], %s1772_s16 }
  0xd8   : > { %s332_s9 = scalar_lea.sflag [#allocation10], %s313_s23  ;;  %p3340_p7 = scmp.ne.s32.totalorder %s3324_s15, 0 }
  0xd9   : > { %s2945_s26 = scalar_lea.vmem [#allocation9], %s1925_s10 }
  0xda   : > { %2460 = dma.done.wait (%p3340_p7), %s332_s9, 3584  }
  0xdb   : > { %2462 = vsyncadd (%p3340_p7), %s332_s9, 4294963712  ;;  %s1773_s17 = sshll.u32 %s315_s3, 9 }
  0xdc   : > { %s2951_s30 = scalar_lea.vmem [#allocation11], %s1773_s17 }
  0xdd   : > { %2464 = dma.done.wait (%p3339_p0), %s332_s9, 8192  }
  0xde   : > { %2466 = vsyncadd (%p3339_p0), %s332_s9, 4294959104  ;;  %s383_s12 = sand.u32 1, %s2477_s19   ;;  %s3341_s28 = sld [smem:[#allocation21_spill]] }
  0xdf   : > { %s1926_s27 = smul.u32 224, %s383_s12 }
  0xe1   : > { %s2960_s13 = scalar_lea.vmem [#allocation12], %s1926_s27 }
  0xe4   : > { %p1774_p4 = scmp.ne.s32.totalorder %s3341_s28, 0 }
  0xe5   : > { %v2537_v0 = vmov (!%p1774_p4), 0.0  }
  0xe6   : > { %395 = sbr.rel (%p1774_p4) target bundleno = 244 (0xf4), region = 64  ;;  %396 = vst [vmem:[#allocation2] sm:$0xff] (!%p1774_p4), %v2537_v0  ;;  %397 = vst [vmem:[#allocation2 + $0x8] sm:$0xff] (!%p1774_p4), %v2537_v0 }
  0xe7   : > { %398 = vst [vmem:[#allocation2 + $0x10] sm:$0xff] (!%p1774_p4), %v2537_v0  ;;  %399 = vst [vmem:[#allocation2 + $0x18] sm:$0xff] (!%p1774_p4), %v2537_v0 }
  0xe8   : > { %400 = vst [vmem:[#allocation2 + $0x20] sm:$0xff] (!%p1774_p4), %v2537_v0  ;;  %401 = vst [vmem:[#allocation2 + $0x28] sm:$0xff] (!%p1774_p4), %v2537_v0 }
  0xe9   : > { %402 = vst [vmem:[#allocation2 + $0x30] sm:$0xff] (!%p1774_p4), %v2537_v0  ;;  %403 = vst [vmem:[#allocation2 + $0x38] sm:$0xff] (!%p1774_p4), %v2537_v0 }
  0xea   : > { %404 = vst [vmem:[#allocation2 + $0x40] sm:$0xff] (!%p1774_p4), %v2537_v0  ;;  %405 = vst [vmem:[#allocation2 + $0x48] sm:$0xff] (!%p1774_p4), %v2537_v0 }
  0xeb   : > { %406 = vst [vmem:[#allocation2 + $0x50] sm:$0xff] (!%p1774_p4), %v2537_v0  ;;  %407 = vst [vmem:[#allocation2 + $0x58] sm:$0xff] (!%p1774_p4), %v2537_v0 }
  0xec   : > { %408 = vst [vmem:[#allocation2 + $0x60] sm:$0xff] (!%p1774_p4), %v2537_v0  ;;  %409 = vst [vmem:[#allocation2 + $0x68] sm:$0xff] (!%p1774_p4), %v2537_v0 }
  0xed   : > { %410 = vst [vmem:[#allocation2 + $0x70] sm:$0xff] %v2537_v0  ;;  %411 = vst [vmem:[#allocation2 + $0x78] sm:$0xff] %v2537_v0 }
  0xee   : > { %412 = vst [vmem:[#allocation2 + $0x80] sm:$0xff] %v2537_v0  ;;  %413 = vst [vmem:[#allocation2 + $0x88] sm:$0xff] %v2537_v0 }
  0xef   : > { %414 = vst [vmem:[#allocation2 + $0x90] sm:$0xff] %v2537_v0  ;;  %415 = vst [vmem:[#allocation2 + $0x98] sm:$0xff] %v2537_v0 }
  0xf0   : > { %416 = vst [vmem:[#allocation2 + $0xa0] sm:$0xff] %v2537_v0  ;;  %417 = vst [vmem:[#allocation2 + $0xa8] sm:$0xff] %v2537_v0 }
  0xf1   : > { %418 = vst [vmem:[#allocation2 + $0xb0] sm:$0xff] %v2537_v0  ;;  %419 = vst [vmem:[#allocation2 + $0xb8] sm:$0xff] %v2537_v0 }
  0xf2   : > { %420 = vst [vmem:[#allocation2 + $0xc0] sm:$0xff] %v2537_v0  ;;  %421 = vst [vmem:[#allocation2 + $0xc8] sm:$0xff] %v2537_v0 }
  0xf3   : > { %422 = vst [vmem:[#allocation2 + $0xd0] sm:$0xff] %v2537_v0  ;;  %423 = vst [vmem:[#allocation2 + $0xd8] sm:$0xff] %v2537_v0 }
  0xf4 PF: > { %v2089_v1 = vld [vmem:[%s2936_s7 + $0x4] ss:$16 sps:$4 sm:$0xff]   ;;  %v2091_v2 = vld [vmem:[%s2936_s7 + $0xc] ss:$16 sps:$4 sm:$0xff]   ;;  %v2538_v3 = vmov 0.0   ;;  %vm489_vm0 = vcmask 457728  }
  0xf5   : > { %557 = vmatprep.mubr.f32.mxu0 %v2538_v3  ;;  %628 = vmatprep.mubr.f32.mxu1 %v2538_v3  ;;  %v2093_v4 = vld [vmem:[%s2936_s7] ss:$16 sps:$4 sm:$0xff]   ;;  %v2094_v5 = vld [vmem:[%s2936_s7 + $0x8] ss:$16 sps:$4 sm:$0xff]   ;;  %v2095_v6 = vld [vmem:[%s2936_s7 + $0x24] ss:$16 sps:$4 sm:$0xff]  }
  0xf6   : > { %1858 = vmatprep.subr.bf16.mxu0 %v2089_v1  ;;  %1870 = vmatprep.subr.bf16.mxu1 %v2091_v2  ;;  %v2097_v7 = vld [vmem:[%s2936_s7 + $0x2c] ss:$16 sps:$4 sm:$0xff]   ;;  %v2099_v8 = vld [vmem:[%s2936_s7 + $0x20] ss:$16 sps:$4 sm:$0xff]   ;;  %v2100_v9 = vld [vmem:[%s2936_s7 + $0x28] ss:$16 sps:$4 sm:$0xff]  }
  0xf7   : > { %1860 = vmatpush1.bf16.msra.mxu0 %v2093_v4  ;;  %1872 = vmatpush1.bf16.msra.mxu1 %v2094_v5  ;;  %v2101_v10 = vld [vmem:[%s2936_s7 + $0x44] ss:$16 sps:$4 sm:$0xff]   ;;  %v2103_v11 = vld [vmem:[%s2936_s7 + $0x4c] ss:$16 sps:$4 sm:$0xff]   ;;  %v2105_v12 = vld [vmem:[%s2936_s7 + $0x40] ss:$16 sps:$4 sm:$0xff]  }
  0xf8   : > { %1862 = vmatprep.subr.bf16.mxu0 %v2095_v6  ;;  %1874 = vmatprep.subr.bf16.mxu1 %v2097_v7  ;;  %v2106_v13 = vld [vmem:[%s2936_s7 + $0x48] ss:$16 sps:$4 sm:$0xff]   ;;  %v437_v14 = vld [vmem:[%s2936_s7 + $0x60] sm:$0xff]  ;;  %v424_v20 = vld [vmem:[#allocation3] sm:$0x1]  ;;  %s3342_s8 = sld [smem:[#allocation21_spill]] }
  0xf9   : > { %v438_v15 = vld [vmem:[%s2936_s7 + $0x68] sm:$0xff]  ;;  %v464_v16 = vunpack.c.h.bf16 %v437_v14  ;;  %v463_v18 = vunpack.c.l.bf16 %v437_v14 }
  0xfa   : > { %v466_v17 = vunpack.c.h.bf16 %v438_v15  ;;  %v465_v19 = vunpack.c.l.bf16 %v438_v15  ;;  %v2109_v21 = vld [vmem:[%s2951_s30 + $0x4] ss:$8 sps:$4 sm:$0xff]   ;;  %v2107_v23 = vld [vmem:[%s2951_s30] ss:$8 sps:$4 sm:$0xff]   ;;  %v2115_v25 = vld [vmem:[%s2951_s30 + $0x14] ss:$8 sps:$4 sm:$0xff]  }
  0xfb   : > { %1864 = vmatpush1.bf16.msra.mxu0 %v2099_v8  ;;  %1876 = vmatpush1.bf16.msra.mxu1 %v2100_v9  ;;  %v2112_v22 = vld [vmem:[%s2951_s30 + $0x104] ss:$8 sps:$4 sm:$0xff]   ;;  %v2110_v24 = vld [vmem:[%s2951_s30 + $0x100] ss:$8 sps:$4 sm:$0xff]   ;;  %v2118_v26 = vld [vmem:[%s2951_s30 + $0x114] ss:$8 sps:$4 sm:$0xff]  }
  0xfc   : > { %1866 = vmatprep.subr.bf16.mxu0 %v2101_v10  ;;  %1878 = vmatprep.subr.bf16.mxu1 %v2103_v11  ;;  %v2113_v27 = vld [vmem:[%s2951_s30 + $0x10] ss:$8 sps:$4 sm:$0xff]   ;;  %v2121_v29 = vld [vmem:[%s2951_s30 + $0x24] ss:$8 sps:$4 sm:$0xff]   ;;  %v2119_v31 = vld [vmem:[%s2951_s30 + $0x20] ss:$8 sps:$4 sm:$0xff]  }
  0xfd   : > { %v2116_v28 = vld [vmem:[%s2951_s30 + $0x110] ss:$8 sps:$4 sm:$0xff]   ;;  %v2124_v30 = vld [vmem:[%s2951_s30 + $0x124] ss:$8 sps:$4 sm:$0xff]   ;;  %v2122_v32 = vld [vmem:[%s2951_s30 + $0x120] ss:$8 sps:$4 sm:$0xff]  }
  0xfe   : > { %v2127_v33 = vld [vmem:[%s2951_s30 + $0x34] ss:$8 sps:$4 sm:$0xff]   ;;  %v2125_v35 = vld [vmem:[%s2951_s30 + $0x30] ss:$8 sps:$4 sm:$0xff]   ;;  %v2133_v37 = vld [vmem:[%s2951_s30 + $0x44] ss:$8 sps:$4 sm:$0xff]  }
  0xff   : > { %1868 = vmatpush1.bf16.msra.mxu0 %v2105_v12  ;;  %1880 = vmatpush1.bf16.msra.mxu1 %v2106_v13  ;;  %v2130_v34 = vld [vmem:[%s2951_s30 + $0x134] ss:$8 sps:$4 sm:$0xff]   ;;  %v2128_v36 = vld [vmem:[%s2951_s30 + $0x130] ss:$8 sps:$4 sm:$0xff]   ;;  %v2136_v38 = vld [vmem:[%s2951_s30 + $0x144] ss:$8 sps:$4 sm:$0xff]  }
 0x100   : > { %505 = vmatprep.subr.mxu0 %v464_v16  ;;  %576 = vmatprep.subr.mxu1 %v466_v17  ;;  %v2131_v39 = vld [vmem:[%s2951_s30 + $0x40] ss:$8 sps:$4 sm:$0xff]   ;;  %v2139_v41 = vld [vmem:[%s2951_s30 + $0x54] ss:$8 sps:$4 sm:$0xff]   ;;  %v2137_v43 = vld [vmem:[%s2951_s30 + $0x50] ss:$8 sps:$4 sm:$0xff]  }
 0x101   : > { %v2134_v40 = vld [vmem:[%s2951_s30 + $0x140] ss:$8 sps:$4 sm:$0xff]   ;;  %v2142_v42 = vld [vmem:[%s2951_s30 + $0x154] ss:$8 sps:$4 sm:$0xff]   ;;  %v2140_v44 = vld [vmem:[%s2951_s30 + $0x150] ss:$8 sps:$4 sm:$0xff]  }
 0x102   : > { %v2145_v45 = vld [vmem:[%s2951_s30 + $0x64] ss:$8 sps:$4 sm:$0xff]   ;;  %v2143_v47 = vld [vmem:[%s2951_s30 + $0x60] ss:$8 sps:$4 sm:$0xff]   ;;  %v2151_v49 = vld [vmem:[%s2951_s30 + $0x74] ss:$8 sps:$4 sm:$0xff]  }
 0x103   : > { %506 = vmatpush1.msra.mxu0 %v463_v18  ;;  %577 = vmatpush1.msra.mxu1 %v465_v19  ;;  %v2148_v46 = vld [vmem:[%s2951_s30 + $0x164] ss:$8 sps:$4 sm:$0xff]   ;;  %v2146_v48 = vld [vmem:[%s2951_s30 + $0x160] ss:$8 sps:$4 sm:$0xff]   ;;  %v2154_v50 = vld [vmem:[%s2951_s30 + $0x174] ss:$8 sps:$4 sm:$0xff]  }
 0x104   : > { %1775 = vmatmul.mubr.msk.f32.vlgmr.msra.gmra.mrb[0].mxu0 %vm489_vm0, %v424_v20  ;;  %1776 = vmatmul.mubr.msk.f32.vlgmr.msra.gmra.mrb[0].mxu1 %vm489_vm0, %v424_v20  ;;  %v2149_v51 = vld [vmem:[%s2951_s30 + $0x70] ss:$8 sps:$4 sm:$0xff]   ;;  %v2157_v53 = vld [vmem:[%s2951_s30 + $0x84] ss:$8 sps:$4 sm:$0xff]   ;;  %v2155_v55 = vld [vmem:[%s2951_s30 + $0x80] ss:$8 sps:$4 sm:$0xff]  }
 0x105   : > { %1255 = vmatprep.subr.bf16.mxu1 %v2109_v21  ;;  %1358 = vmatprep.subr.bf16.mxu0 %v2112_v22  ;;  %v2152_v52 = vld [vmem:[%s2951_s30 + $0x170] ss:$8 sps:$4 sm:$0xff]   ;;  %v2160_v54 = vld [vmem:[%s2951_s30 + $0x184] ss:$8 sps:$4 sm:$0xff]   ;;  %v2158_v56 = vld [vmem:[%s2951_s30 + $0x180] ss:$8 sps:$4 sm:$0xff]   ;;  %v469_v21 = vlaneseq }
 0x106   : > { %1256 = vmatpush1.bf16.msra.mxu1 %v2107_v23  ;;  %1359 = vmatpush1.bf16.msra.mxu0 %v2110_v24  ;;  %v2163_v57 = vld [vmem:[%s2951_s30 + $0x94] ss:$8 sps:$4 sm:$0xff]   ;;  %v2161_v59 = vld [vmem:[%s2951_s30 + $0x90] ss:$8 sps:$4 sm:$0xff]   ;;  %v2169_v61 = vld [vmem:[%s2951_s30 + $0xa4] ss:$8 sps:$4 sm:$0xff]  }
 0x107   : > { %1257 = vmatprep.subr.bf16.mxu1 %v2115_v25  ;;  %1360 = vmatprep.subr.bf16.mxu0 %v2118_v26  ;;  %v2166_v58 = vld [vmem:[%s2951_s30 + $0x194] ss:$8 sps:$4 sm:$0xff]   ;;  %v2164_v60 = vld [vmem:[%s2951_s30 + $0x190] ss:$8 sps:$4 sm:$0xff]   ;;  %v2172_v62 = vld [vmem:[%s2951_s30 + $0x1a4] ss:$8 sps:$4 sm:$0xff]  }
 0x108   : > { %v2167_v63 = vld [vmem:[%s2951_s30 + $0xa0] ss:$8 sps:$4 sm:$0xff]   ;;  %v2175_v1 = vld [vmem:[%s2951_s30 + $0xb4] ss:$8 sps:$4 sm:$0xff]   ;;  %v2173_v3 = vld [vmem:[%s2951_s30 + $0xb0] ss:$8 sps:$4 sm:$0xff]  }
 0x109   : > { %v2170_v0 = vld [vmem:[%s2951_s30 + $0x1a0] ss:$8 sps:$4 sm:$0xff]   ;;  %v2178_v2 = vld [vmem:[%s2951_s30 + $0x1b4] ss:$8 sps:$4 sm:$0xff]   ;;  %v2176_v4 = vld [vmem:[%s2951_s30 + $0x1b0] ss:$8 sps:$4 sm:$0xff]  }
 0x10a   : > { %1258 = vmatpush1.bf16.msra.mxu1 %v2113_v27  ;;  %1361 = vmatpush1.bf16.msra.mxu0 %v2116_v28  ;;  %v2181_v5 = vld [vmem:[%s2951_s30 + $0xc4] ss:$8 sps:$4 sm:$0xff]   ;;  %v2179_v7 = vld [vmem:[%s2951_s30 + $0xc0] ss:$8 sps:$4 sm:$0xff]   ;;  %v2187_v9 = vld [vmem:[%s2951_s30 + $0xd4] ss:$8 sps:$4 sm:$0xff]  }
 0x10b   : > { %1259 = vmatprep.subr.bf16.mxu1 %v2121_v29  ;;  %1362 = vmatprep.subr.bf16.mxu0 %v2124_v30  ;;  %v2184_v6 = vld [vmem:[%s2951_s30 + $0x1c4] ss:$8 sps:$4 sm:$0xff]   ;;  %v2182_v8 = vld [vmem:[%s2951_s30 + $0x1c0] ss:$8 sps:$4 sm:$0xff]   ;;  %v2190_v10 = vld [vmem:[%s2951_s30 + $0x1d4] ss:$8 sps:$4 sm:$0xff]  }
 0x10c   : > { %v2185_v11 = vld [vmem:[%s2951_s30 + $0xd0] ss:$8 sps:$4 sm:$0xff]   ;;  %v2193_v13 = vld [vmem:[%s2951_s30 + $0xe4] ss:$8 sps:$4 sm:$0xff]   ;;  %v2191_v15 = vld [vmem:[%s2951_s30 + $0xe0] ss:$8 sps:$4 sm:$0xff]  }
 0x10d   : > { %v2188_v12 = vld [vmem:[%s2951_s30 + $0x1d0] ss:$8 sps:$4 sm:$0xff]   ;;  %v2196_v14 = vld [vmem:[%s2951_s30 + $0x1e4] ss:$8 sps:$4 sm:$0xff]   ;;  %v2194_v16 = vld [vmem:[%s2951_s30 + $0x1e0] ss:$8 sps:$4 sm:$0xff]  }
 0x10e   : > { %1260 = vmatpush1.bf16.msra.mxu1 %v2119_v31  ;;  %1363 = vmatpush1.bf16.msra.mxu0 %v2122_v32  ;;  %v2197_v17 = vld [vmem:[%s2951_s30 + $0xf0] ss:$8 sps:$4 sm:$0xff]   ;;  %v2199_v18 = vld [vmem:[%s2951_s30 + $0xf4] ss:$8 sps:$4 sm:$0xff]   ;;  %v470_v22 = vshrl.u32 %v469_v21, 7  ;;  %p1845_p10 = scmp.ne.s32.totalorder %s3342_s8, 2 }
 0x10f   : > { %1261 = vmatprep.subr.bf16.mxu1 %v2127_v33  ;;  %1364 = vmatprep.subr.bf16.mxu0 %v2130_v34  ;;  %v2200_v19 = vld [vmem:[%s2951_s30 + $0x1f0] ss:$8 sps:$4 sm:$0xff]   ;;  %v2202_v20 = vld [vmem:[%s2951_s30 + $0x1f4] ss:$8 sps:$4 sm:$0xff]  }
 0x110   : > { %v3041_v23 = vsub.s32 0, %v470_v22  ;;  %v479_v24 = vsub.s32 2, %v470_v22  ;;  %v467_v25 = vld [vmem:[%s2943_s4] sm:$0xf]  ;;  %v475_v26 = vsub.s32 1, %v470_v22  ;;  %v483_v27 = vsub.s32 3, %v470_v22 }
 0x112   : > { %1262 = vmatpush1.bf16.msra.mxu1 %v2125_v35  ;;  %1365 = vmatpush1.bf16.msra.mxu0 %v2128_v36  ;;  %v472_v28 = vrot.slane %v467_v25, %v3041_v23  ;;  %v480_v29 = vrot.slane %v467_v25, %v479_v24  ;;  %v476_v30 = vrot.slane %v467_v25, %v475_v26 }
 0x113   : > { %1263 = vmatprep.subr.bf16.mxu1 %v2133_v37  ;;  %1366 = vmatprep.subr.bf16.mxu0 %v2136_v38  ;;  %v484_v31 = vrot.slane %v467_v25, %v483_v27  ;;  %v667_v27 = vld [vmem:[%s2945_s26 + $0x40] sm:$0xff] }
 0x116   : > { %1264 = vmatpush1.bf16.msra.mxu1 %v2131_v39  ;;  %1367 = vmatpush1.bf16.msra.mxu0 %v2134_v40 }
 0x117   : > { %1265 = vmatprep.subr.bf16.mxu1 %v2139_v41  ;;  %1368 = vmatprep.subr.bf16.mxu0 %v2142_v42 }
 0x11a   : > { %1266 = vmatpush1.bf16.msra.mxu1 %v2137_v43  ;;  %1369 = vmatpush1.bf16.msra.mxu0 %v2140_v44 }
 0x11b   : > { %1267 = vmatprep.subr.bf16.mxu1 %v2145_v45  ;;  %1370 = vmatprep.subr.bf16.mxu0 %v2148_v46 }
 0x11e   : > { %1268 = vmatpush1.bf16.msra.mxu1 %v2143_v47  ;;  %1371 = vmatpush1.bf16.msra.mxu0 %v2146_v48 }
 0x11f   : > { %1269 = vmatprep.subr.bf16.mxu1 %v2151_v49  ;;  %1372 = vmatprep.subr.bf16.mxu0 %v2154_v50 }
 0x122   : > { %1270 = vmatpush1.bf16.msra.mxu1 %v2149_v51  ;;  %1373 = vmatpush1.bf16.msra.mxu0 %v2152_v52  ;;  %v659_v52 = vld [vmem:[%s2945_s26] sm:$0xff] }
 0x123   : > { %1271 = vmatprep.subr.bf16.mxu1 %v2157_v53  ;;  %1374 = vmatprep.subr.bf16.mxu0 %v2160_v54  ;;  %v661_v53 = vld [vmem:[%s2945_s26 + $0x10] sm:$0xff]  ;;  %v660_v54 = vld [vmem:[%s2945_s26 + $0x8] sm:$0xff] }
 0x126   : > { %1272 = vmatpush1.bf16.msra.mxu1 %v2155_v55  ;;  %1375 = vmatpush1.bf16.msra.mxu0 %v2158_v56  ;;  %v662_v55 = vld [vmem:[%s2945_s26 + $0x18] sm:$0xff]  ;;  %v663_v56 = vld [vmem:[%s2945_s26 + $0x20] sm:$0xff] }
 0x127   : > { %1273 = vmatprep.subr.bf16.mxu1 %v2163_v57  ;;  %1376 = vmatprep.subr.bf16.mxu0 %v2166_v58  ;;  %v665_v57 = vld [vmem:[%s2945_s26 + $0x30] sm:$0xff]  ;;  %v695_v26 = vunpack.c.l.bf16 %v663_v56 }
 0x12a   : > { %1274 = vmatpush1.bf16.msra.mxu1 %v2161_v59  ;;  %1377 = vmatpush1.bf16.msra.mxu0 %v2164_v60  ;;  %v687_v59 = vunpack.c.l.bf16 %v659_v52  ;;  %v688_v60 = vunpack.c.h.bf16 %v659_v52 }
 0x12b   : > { %1275 = vmatprep.subr.bf16.mxu1 %v2169_v61  ;;  %1378 = vmatprep.subr.bf16.mxu0 %v2172_v62  ;;  %v691_v61 = vunpack.c.l.bf16 %v661_v53  ;;  %v689_v62 = vunpack.c.l.bf16 %v660_v54 }
 0x12e   : > { %1276 = vmatpush1.bf16.msra.mxu1 %v2167_v63  ;;  %1379 = vmatpush1.bf16.msra.mxu0 %v2170_v0  ;;  %v664_v63 = vld [vmem:[%s2945_s26 + $0x28] sm:$0xff]  ;;  %v666_v0 = vld [vmem:[%s2945_s26 + $0x38] sm:$0xff] }
 0x12f   : > { %1277 = vmatprep.subr.bf16.mxu1 %v2175_v1  ;;  %1380 = vmatprep.subr.bf16.mxu0 %v2178_v2 }
 0x132   : > { %1278 = vmatpush1.bf16.msra.mxu1 %v2173_v3  ;;  %1381 = vmatpush1.bf16.msra.mxu0 %v2176_v4  ;;  %v692_v3 = vunpack.c.h.bf16 %v661_v53  ;;  %v693_v4 = vunpack.c.l.bf16 %v662_v55 }
 0x133   : > { %1279 = vmatprep.subr.bf16.mxu1 %v2181_v5  ;;  %1382 = vmatprep.subr.bf16.mxu0 %v2184_v6  ;;  %v696_v5 = vunpack.c.h.bf16 %v663_v56  ;;  %v703_v56 = vunpack.c.l.bf16 %v667_v27 }
 0x136   : > { %1280 = vmatpush1.bf16.msra.mxu1 %v2179_v7  ;;  %1383 = vmatpush1.bf16.msra.mxu0 %v2182_v8  ;;  %v690_v8 = vunpack.c.h.bf16 %v660_v54  ;;  %v671_v54 = vld [vmem:[%s2945_s26 + $0x60] sm:$0xff] }
 0x137   : > { %1281 = vmatprep.subr.bf16.mxu1 %v2187_v9  ;;  %1384 = vmatprep.subr.bf16.mxu0 %v2190_v10  ;;  %v694_v9 = vunpack.c.h.bf16 %v662_v55  ;;  %v700_v10 = vunpack.c.h.bf16 %v665_v57  ;;  %v673_v55 = vld [vmem:[%s2945_s26 + $0x70] sm:$0xff] }
 0x13a   : > { %1282 = vmatpush1.bf16.msra.mxu1 %v2185_v11  ;;  %1385 = vmatpush1.bf16.msra.mxu0 %v2188_v12 }
 0x13b   : > { %1283 = vmatprep.subr.bf16.mxu1 %v2193_v13  ;;  %1386 = vmatprep.subr.bf16.mxu0 %v2196_v14  ;;  %v698_v13 = vunpack.c.h.bf16 %v664_v63  ;;  %v702_v14 = vunpack.c.h.bf16 %v666_v0 }
 0x13e   : > { %1284 = vmatpush1.bf16.msra.mxu1 %v2191_v15  ;;  %1387 = vmatpush1.bf16.msra.mxu0 %v2194_v16 }
 0x13f   : > { %1285 = vmatprep.subr.bf16.mxu1 %v2199_v18  ;;  %1388 = vmatprep.subr.bf16.mxu0 %v2202_v20 }
 0x142   : > { %1286 = vmatpush1.bf16.msra.mxu1 %v2197_v17  ;;  %1389 = vmatpush1.bf16.msra.mxu0 %v2200_v19 }
 0x1d7   : > { %v559_v32 = vpop.f32.mrb[0].mxu0  ;;  %v630_v33 = vpop.f32.mrb[0].mxu1 }
 0x1d8   : > { %v560_v34 = vadd.f32 %v559_v32, %v472_v28  ;;  %v631_v35 = vadd.f32 %v630_v33, %v480_v29  ;;  %v561_v36 = vpop.f32.mrb[1].mxu0  ;;  %v632_v37 = vpop.f32.mrb[1].mxu1  ;;  %v669_v28 = vld [vmem:[%s2945_s26 + $0x50] sm:$0xff]  ;;  %v699_v32 = vunpack.c.l.bf16 %v665_v57  ;;  %v668_v33 = vld [vmem:[%s2945_s26 + $0x48] sm:$0xff] }
 0x1d9   : > { %v562_v38 = vadd.f32 %v561_v36, %v476_v30  ;;  %v633_v39 = vadd.f32 %v632_v37, %v484_v31  ;;  %v697_v37 = vunpack.c.l.bf16 %v664_v63  ;;  %v672_v57 = vld [vmem:[%s2945_s26 + $0x68] sm:$0xff] }
 0x1da   : > { %v1777_v40 = vmul.f32 -1.442695, %v560_v34  ;;  %v1779_v41 = vmul.f32 -1.442695, %v631_v35  ;;  %v670_v34 = vld [vmem:[%s2945_s26 + $0x58] sm:$0xff] }
 0x1db   : > { %v1778_v42 = vmul.f32 -1.442695, %v562_v38  ;;  %v1780_v43 = vmul.f32 -1.442695, %v633_v39  ;;  %v701_v38 = vunpack.c.l.bf16 %v666_v0 }
 0x1dc   : > { %2203 = vpow2.f32 %v1777_v40 }
 0x1dd   : > { %2205 = vpow2.f32 %v1779_v41  ;;  %v704_v41 = vunpack.c.h.bf16 %v667_v27 }
 0x1de   : > { %2207 = vpow2.f32 %v1778_v42  ;;  %v708_v42 = vunpack.c.h.bf16 %v669_v28 }
 0x1df   : > { %2209 = vpow2.f32 %v1780_v43 }
 0x1e6   : > { %v2204_v44 = vpop.eup %2203 }
 0x1e7   : > { %v2206_v45 = vpop.eup %2205  ;;  %v647_v46 = vadd.f32 1.0, %v2204_v44  ;;  %v706_v44 = vunpack.c.h.bf16 %v668_v33 }
 0x1e8   : > { %v2208_v47 = vpop.eup %2207  ;;  %v649_v48 = vadd.f32 1.0, %v2206_v45  ;;  %v710_v45 = vunpack.c.h.bf16 %v670_v34 }
 0x1e9   : > { %v2210_v49 = vpop.eup %2209  ;;  %2211 = vrcp.f32 %v647_v46  ;;  %v648_v50 = vadd.f32 1.0, %v2208_v47 }
 0x1ea   : > { %2213 = vrcp.f32 %v649_v48  ;;  %v650_v51 = vadd.f32 1.0, %v2210_v49 }
 0x1eb   : > { %2215 = vrcp.f32 %v648_v50 }
 0x1ec   : > { %2217 = vrcp.f32 %v650_v51 }
 0x1f3   : > { %v2212_v58 = vpop.eup %2211 }
 0x1f4   : > { %v2214_v1 = vpop.eup %2213  ;;  %v3054_v2 = vrot.slane %v2212_v58, %v3041_v23  ;;  %v674_v58 = vld [vmem:[%s2945_s26 + $0x78] sm:$0xff] }
 0x1f5   : > { %v2216_v6 = vpop.eup %2215  ;;  %v3057_v7 = vrot.slane %v2214_v1, %v3041_v23  ;;  %v712_v1 = vunpack.c.h.bf16 %v671_v54 }
 0x1f6   : > { %v2218_v11 = vpop.eup %2217  ;;  %v3060_v12 = vrot.slane %v2216_v6, %v3041_v23  ;;  %v759_v16 = vmul.f32 %v3054_v2, %v687_v59  ;;  %v763_v17 = vmul.f32 %v3054_v2, %v691_v61  ;;  %v767_v46 = vmul.f32 %v3054_v2, %v695_v26 }
 0x1f7   : > { %v3063_v15 = vrot.slane %v2218_v11, %v3041_v23  ;;  %v761_v18 = vmul.f32 %v3057_v7, %v689_v62  ;;  %v765_v21 = vmul.f32 %v3057_v7, %v693_v4  ;;  %v771_v47 = vmul.f32 %v3054_v2, %v699_v32 }
 0x1f8   : > { %v760_v19 = vmul.f32 %v3060_v12, %v688_v60  ;;  %v764_v20 = vmul.f32 %v3060_v12, %v692_v3  ;;  %v768_v22 = vmul.f32 %v3060_v12, %v696_v5  ;;  %v772_v25 = vmul.f32 %v3060_v12, %v700_v10 }
 0x1f9   : > { %v762_v24 = vmul.f32 %v3063_v15, %v690_v8  ;;  %v766_v23 = vmul.f32 %v3063_v15, %v694_v9  ;;  %v770_v30 = vmul.f32 %v3063_v15, %v698_v13  ;;  %v774_v31 = vmul.f32 %v3063_v15, %v702_v14 }
 0x1fa   : > { %v816_v29 = vpack.c.bf16 %v764_v20, %v760_v19  ;;  %v815_v36 = vpack.c.bf16 %v763_v17, %v759_v16  ;;  %v817_v39 = vpack.c.bf16 %v765_v21, %v761_v18  ;;  %v820_v40 = vpack.c.bf16 %v772_v25, %v768_v22  ;;  %v675_v18 = vld [vmem:[%s2945_s26 + $0x80] sm:$0xff]  ;;  %v677_v19 = vld [vmem:[%s2945_s26 + $0x90] sm:$0xff]  ;;  %v676_v21 = vld [vmem:[%s2945_s26 + $0x88] sm:$0xff] }
 0x1fb   : > { %v818_v35 = vpack.c.bf16 %v766_v23, %v762_v24  ;;  %v822_v43 = vpack.c.bf16 %v774_v31, %v770_v30  ;;  %v769_v48 = vmul.f32 %v3057_v7, %v697_v37  ;;  %v773_v49 = vmul.f32 %v3057_v7, %v701_v38  ;;  %v678_v22 = vld [vmem:[%s2945_s26 + $0x98] sm:$0xff] }
 0x1fc   : > { %1287 = vmatprep.mubr.bf16.mxu1 %v816_v29  ;;  %v776_v50 = vmul.f32 %v3060_v12, %v704_v41  ;;  %v780_v51 = vmul.f32 %v3060_v12, %v708_v42  ;;  %v778_v52 = vmul.f32 %v3063_v15, %v706_v44  ;;  %v782_v53 = vmul.f32 %v3063_v15, %v710_v45  ;;  %v679_v42 = vld [vmem:[%s2945_s26 + $0xa0] sm:$0xff]  ;;  %v680_v45 = vld [vmem:[%s2945_s26 + $0xa8] sm:$0xff] }
 0x1fd   : > { %1390 = vmatprep.mubr.bf16.mxu0 %v818_v35  ;;  %1288 = vmatmul.mubr.bf16.vlgmr.msra.gmra.mrb[4].mxu1 %v815_v36  ;;  %v819_v59 = vpack.c.bf16 %v771_v47, %v767_v46  ;;  %v707_v60 = vunpack.c.l.bf16 %v669_v28  ;;  %v705_v61 = vunpack.c.l.bf16 %v668_v33  ;;  %v709_v62 = vunpack.c.l.bf16 %v670_v34  ;;  %v682_v46 = vld [vmem:[%s2945_s26 + $0xb8] sm:$0xff] }
 0x1fe   : > { %1391 = vmatmul.mubr.bf16.vlgmr.msra.gmra.mrb[4].mxu0 %v817_v39  ;;  %1297 = vmatprep.mubr.bf16.mxu1 %v820_v40  ;;  %v821_v63 = vpack.c.bf16 %v773_v49, %v769_v48  ;;  %v824_v0 = vpack.c.bf16 %v780_v51, %v776_v50  ;;  %v716_v3 = vunpack.c.h.bf16 %v673_v55  ;;  %v826_v4 = vpack.c.bf16 %v782_v53, %v778_v52 }
 0x1ff   : > { %1400 = vmatprep.mubr.bf16.mxu0 %v822_v43  ;;  %v714_v5 = vunpack.c.h.bf16 %v672_v57  ;;  %v718_v6 = vunpack.c.h.bf16 %v674_v58  ;;  %v775_v8 = vmul.f32 %v3054_v2, %v703_v56  ;;  %v779_v9 = vmul.f32 %v3054_v2, %v707_v60  ;;  %v681_v43 = vld [vmem:[%s2945_s26 + $0xb0] sm:$0xff] }
 0x200   : > { %v777_v10 = vmul.f32 %v3057_v7, %v705_v61  ;;  %v781_v11 = vmul.f32 %v3057_v7, %v709_v62  ;;  %v784_v13 = vmul.f32 %v3060_v12, %v712_v1  ;;  %v788_v14 = vmul.f32 %v3060_v12, %v716_v3  ;;  %v683_v3 = vld [vmem:[%s2945_s26 + $0xc0] sm:$0xff] }
 0x201   : > { %v786_v16 = vmul.f32 %v3063_v15, %v714_v5  ;;  %v790_v17 = vmul.f32 %v3063_v15, %v718_v6  ;;  %v711_v20 = vunpack.c.l.bf16 %v671_v54  ;;  %v823_v24 = vpack.c.bf16 %v779_v9, %v775_v8  ;;  %v684_v6 = vld [vmem:[%s2945_s26 + $0xc8] sm:$0xff]  ;;  %v686_v8 = vld [vmem:[%s2945_s26 + $0xd8] sm:$0xff] }
 0x202   : > { %v715_v23 = vunpack.c.l.bf16 %v673_v55  ;;  %v713_v25 = vunpack.c.l.bf16 %v672_v57  ;;  %v717_v26 = vunpack.c.l.bf16 %v674_v58  ;;  %v825_v27 = vpack.c.bf16 %v781_v11, %v777_v10 }
 0x203   : > { %v828_v28 = vpack.c.bf16 %v788_v14, %v784_v13  ;;  %v720_v29 = vunpack.c.h.bf16 %v675_v18  ;;  %v724_v30 = vunpack.c.h.bf16 %v677_v19  ;;  %v830_v31 = vpack.c.bf16 %v790_v17, %v786_v16 }
 0x204   : > { %v722_v32 = vunpack.c.h.bf16 %v676_v21  ;;  %v726_v33 = vunpack.c.h.bf16 %v678_v22  ;;  %v783_v34 = vmul.f32 %v3054_v2, %v711_v20  ;;  %v787_v35 = vmul.f32 %v3054_v2, %v715_v23 }
 0x205   : > { %1298 = vmatmul.mubr.bf16.gmra.mrb[8].mxu1 %v819_v59  ;;  %v785_v36 = vmul.f32 %v3057_v7, %v713_v25  ;;  %v789_v37 = vmul.f32 %v3057_v7, %v717_v26  ;;  %v792_v38 = vmul.f32 %v3060_v12, %v720_v29  ;;  %v796_v39 = vmul.f32 %v3060_v12, %v724_v30 }
 0x206   : > { %1401 = vmatmul.mubr.bf16.gmra.mrb[8].mxu0 %v821_v63  ;;  %1307 = vmatprep.mubr.bf16.mxu1 %v824_v0  ;;  %v794_v40 = vmul.f32 %v3063_v15, %v722_v32  ;;  %v798_v41 = vmul.f32 %v3063_v15, %v726_v33  ;;  %v719_v44 = vunpack.c.l.bf16 %v675_v18  ;;  %v827_v47 = vpack.c.bf16 %v787_v35, %v783_v34 }
 0x207   : > { %1410 = vmatprep.mubr.bf16.mxu0 %v826_v4  ;;  %v723_v48 = vunpack.c.l.bf16 %v677_v19  ;;  %v721_v49 = vunpack.c.l.bf16 %v676_v21  ;;  %v725_v50 = vunpack.c.l.bf16 %v678_v22  ;;  %v829_v51 = vpack.c.bf16 %v789_v37, %v785_v36  ;;  %v685_v4 = vld [vmem:[%s2945_s26 + $0xd0] sm:$0xff] }
 0x208   : > { %v832_v52 = vpack.c.bf16 %v796_v39, %v792_v38  ;;  %v728_v53 = vunpack.c.h.bf16 %v679_v42  ;;  %v732_v54 = vunpack.c.h.bf16 %v681_v43  ;;  %v834_v55 = vpack.c.bf16 %v798_v41, %v794_v40 }
 0x209   : > { %v730_v56 = vunpack.c.h.bf16 %v680_v45  ;;  %v734_v57 = vunpack.c.h.bf16 %v682_v46  ;;  %v791_v58 = vmul.f32 %v3054_v2, %v719_v44  ;;  %v795_v59 = vmul.f32 %v3054_v2, %v723_v48 }
 0x20a   : > { %v793_v60 = vmul.f32 %v3057_v7, %v721_v49  ;;  %v797_v61 = vmul.f32 %v3057_v7, %v725_v50  ;;  %v800_v62 = vmul.f32 %v3060_v12, %v728_v53  ;;  %v804_v63 = vmul.f32 %v3060_v12, %v732_v54 }
 0x20b   : > { %v802_v0 = vmul.f32 %v3063_v15, %v730_v56  ;;  %v806_v1 = vmul.f32 %v3063_v15, %v734_v57  ;;  %v727_v5 = vunpack.c.l.bf16 %v679_v42  ;;  %v831_v9 = vpack.c.bf16 %v795_v59, %v791_v58 }
 0x20c   : > { %v731_v10 = vunpack.c.l.bf16 %v681_v43  ;;  %v729_v11 = vunpack.c.l.bf16 %v680_v45  ;;  %v733_v13 = vunpack.c.l.bf16 %v682_v46  ;;  %v833_v14 = vpack.c.bf16 %v797_v61, %v793_v60  ;;  %v843_v43 = vld [vmem:[#allocation2] sm:$0xff] }
 0x20d   : > { %1308 = vmatmul.mubr.bf16.gmra.mrb[12].mxu1 %v823_v24  ;;  %v836_v16 = vpack.c.bf16 %v804_v63, %v800_v62  ;;  %v736_v17 = vunpack.c.h.bf16 %v683_v3  ;;  %v740_v18 = vunpack.c.h.bf16 %v685_v4  ;;  %v838_v19 = vpack.c.bf16 %v806_v1, %v802_v0  ;;  %v847_v61 = vld [vmem:[#allocation2 + $0x20] sm:$0xff]  ;;  %v848_v1 = vld [vmem:[#allocation2 + $0x28] sm:$0xff] }
 0x20e   : > { %1411 = vmatmul.mubr.bf16.gmra.mrb[12].mxu0 %v825_v27  ;;  %1317 = vmatprep.mubr.bf16.mxu1 %v828_v28  ;;  %v738_v20 = vunpack.c.h.bf16 %v684_v6  ;;  %v742_v21 = vunpack.c.h.bf16 %v686_v8  ;;  %v799_v22 = vmul.f32 %v3054_v2, %v727_v5  ;;  %v803_v24 = vmul.f32 %v3054_v2, %v731_v10 }
 0x20f   : > { %1420 = vmatprep.mubr.bf16.mxu0 %v830_v31  ;;  %v801_v23 = vmul.f32 %v3057_v7, %v729_v11  ;;  %v805_v25 = vmul.f32 %v3057_v7, %v733_v13  ;;  %v808_v26 = vmul.f32 %v3060_v12, %v736_v17  ;;  %v812_v27 = vmul.f32 %v3060_v12, %v740_v18  ;;  %v850_v13 = vld [vmem:[#allocation2 + $0x38] sm:$0xff] }
 0x210   : > { %v810_v28 = vmul.f32 %v3063_v15, %v738_v20  ;;  %v814_v29 = vmul.f32 %v3063_v15, %v742_v21  ;;  %v835_v30 = vpack.c.bf16 %v803_v24, %v799_v22  ;;  %v735_v31 = vunpack.c.l.bf16 %v683_v3  ;;  %v851_v21 = vld [vmem:[#allocation2 + $0x40] sm:$0xff] }
 0x211   : > { %v739_v32 = vunpack.c.l.bf16 %v685_v4  ;;  %v837_v33 = vpack.c.bf16 %v805_v25, %v801_v23  ;;  %v840_v34 = vpack.c.bf16 %v812_v27, %v808_v26  ;;  %v737_v35 = vunpack.c.l.bf16 %v684_v6  ;;  %v849_v6 = vld [vmem:[#allocation2 + $0x30] sm:$0xff]  ;;  %v852_v25 = vld [vmem:[#allocation2 + $0x48] sm:$0xff] }
 0x212   : > { %v741_v36 = vunpack.c.l.bf16 %v686_v8  ;;  %v842_v37 = vpack.c.bf16 %v814_v29, %v810_v28  ;;  %v807_v38 = vmul.f32 %v3054_v2, %v735_v31  ;;  %v853_v29 = vld [vmem:[#allocation2 + $0x50] sm:$0xff] }
 0x213   : > { %v811_v12 = vmul.f32 %v3054_v2, %v739_v32  ;;  %v809_v39 = vmul.f32 %v3057_v7, %v737_v35 }
 0x214   : > { %v813_v15 = vmul.f32 %v3057_v7, %v741_v36 }
 0x215   : > { %1318 = vmatmul.mubr.bf16.gmra.mrb[16].mxu1 %v827_v47  ;;  %v839_v40 = vpack.c.bf16 %v811_v12, %v807_v38  ;;  %v844_v47 = vld [vmem:[#allocation2 + $0x8] sm:$0xff] }
 0x216   : > { %1421 = vmatmul.mubr.bf16.gmra.mrb[16].mxu0 %v829_v51  ;;  %1327 = vmatprep.mubr.bf16.mxu1 %v832_v52  ;;  %v841_v41 = vpack.c.bf16 %v813_v15, %v809_v39  ;;  %v845_v51 = vld [vmem:[#allocation2 + $0x10] sm:$0xff]  ;;  %v855_v15 = vld [vmem:[#allocation2 + $0x60] sm:$0xff] }
 0x217   : > { %1430 = vmatprep.mubr.bf16.mxu0 %v834_v55  ;;  %v846_v55 = vld [vmem:[#allocation2 + $0x18] sm:$0xff] }
 0x21d   : > { %1328 = vmatmul.mubr.bf16.gmra.mrb[20].mxu1 %v831_v9 }
 0x21e   : > { %1431 = vmatmul.mubr.bf16.gmra.mrb[20].mxu0 %v833_v14  ;;  %1337 = vmatprep.mubr.bf16.mxu1 %v836_v16 }
 0x21f   : > { %1440 = vmatprep.mubr.bf16.mxu0 %v838_v19 }
 0x225   : > { %1338 = vmatmul.mubr.bf16.gmra.mrb[24].mxu1 %v835_v30 }
 0x226   : > { %1441 = vmatmul.mubr.bf16.gmra.mrb[24].mxu0 %v837_v33  ;;  %1347 = vmatprep.mubr.bf16.mxu1 %v840_v34  ;;  %v854_v34 = vld [vmem:[#allocation2 + $0x58] sm:$0xff] }
 0x227   : > { %1450 = vmatprep.mubr.bf16.mxu0 %v842_v37 }
 0x22d   : > { %1348 = vmatmul.mubr.bf16.gmra.mrb[28].mxu1 %v839_v40 }
 0x22e   : > { %1451 = vmatmul.mubr.bf16.gmra.mrb[28].mxu0 %v841_v41 }
 0x2d0   : > { %v1289_v42 = vpop.f32.mrb[4].mxu1 }
 0x2d1   : > { %v1392_v44 = vpop.f32.mrb[4].mxu0  ;;  %v1291_v45 = vpop.f32.mrb[5].mxu1 }
 0x2d2   : > { %v1393_v46 = vadd.f32 %v1392_v44, %v1289_v42  ;;  %v1394_v48 = vpop.f32.mrb[5].mxu0  ;;  %v1293_v49 = vpop.f32.mrb[6].mxu1 }
 0x2d3   : > { %v1395_v50 = vadd.f32 %v1394_v48, %v1291_v45  ;;  %v1396_v52 = vpop.f32.mrb[6].mxu0  ;;  %v1295_v2 = vpop.f32.mrb[7].mxu1 }
 0x2d4   : > { %v1461_v53 = vadd.f32 %v1393_v46, %v843_v43  ;;  %v1397_v54 = vadd.f32 %v1396_v52, %v1293_v49  ;;  %v1398_v7 = vpop.f32.mrb[7].mxu0  ;;  %v856_v43 = vld [vmem:[#allocation2 + $0x68] sm:$0xff]  ;;  %v858_v52 = vld [vmem:[#allocation2 + $0x78] sm:$0xff] }
 0x2d5   : > { %v1462_v56 = vadd.f32 %v1395_v50, %v844_v47  ;;  %v1399_v57 = vadd.f32 %v1398_v7, %v1295_v2  ;;  %v857_v47 = vld [vmem:[#allocation2 + $0x70] sm:$0xff] }
 0x2d6   : > { %1489 = vst [vmem:[#allocation2] sm:$0xff] %v1461_v53  ;;  %v1463_v58 = vadd.f32 %v1397_v54, %v845_v51 }
 0x2d7   : > { %1490 = vst [vmem:[#allocation2 + $0x8] sm:$0xff] %v1462_v56  ;;  %v1464_v59 = vadd.f32 %v1399_v57, %v846_v55  ;;  %v859_v57 = vld [vmem:[#allocation2 + $0x80] sm:$0xff] }
 0x2d8   : > { %1491 = vst [vmem:[#allocation2 + $0x10] sm:$0xff] %v1463_v58  ;;  %v1299_v60 = vpop.f32.mrb[8].mxu1 }
 0x2d9   : > { %1492 = vst [vmem:[#allocation2 + $0x18] sm:$0xff] %v1464_v59  ;;  %v1402_v62 = vpop.f32.mrb[8].mxu0  ;;  %v1301_v63 = vpop.f32.mrb[9].mxu1 }
 0x2da   : > { %v1403_v0 = vadd.f32 %v1402_v62, %v1299_v60  ;;  %v1404_v3 = vpop.f32.mrb[9].mxu0  ;;  %v1303_v4 = vpop.f32.mrb[10].mxu1 }
 0x2db   : > { %v1405_v5 = vadd.f32 %v1404_v3, %v1301_v63  ;;  %v1406_v8 = vpop.f32.mrb[10].mxu0  ;;  %v1305_v9 = vpop.f32.mrb[11].mxu1 }
 0x2dc   : > { %v1465_v10 = vadd.f32 %v1403_v0, %v847_v61  ;;  %v1407_v11 = vadd.f32 %v1406_v8, %v1303_v4  ;;  %v1408_v14 = vpop.f32.mrb[11].mxu0  ;;  %v860_v61 = vld [vmem:[#allocation2 + $0x88] sm:$0xff]  ;;  %v862_v8 = vld [vmem:[#allocation2 + $0x98] sm:$0xff] }
 0x2dd   : > { %v1466_v16 = vadd.f32 %v1405_v5, %v848_v1  ;;  %v1409_v17 = vadd.f32 %v1408_v14, %v1305_v9  ;;  %v861_v1 = vld [vmem:[#allocation2 + $0x90] sm:$0xff] }
 0x2de   : > { %1493 = vst [vmem:[#allocation2 + $0x20] sm:$0xff] %v1465_v10  ;;  %v1467_v18 = vadd.f32 %v1407_v11, %v849_v6 }
 0x2df   : > { %1494 = vst [vmem:[#allocation2 + $0x28] sm:$0xff] %v1466_v16  ;;  %v1468_v19 = vadd.f32 %v1409_v17, %v850_v13  ;;  %v863_v17 = vld [vmem:[#allocation2 + $0xa0] sm:$0xff] }
 0x2e0   : > { %1495 = vst [vmem:[#allocation2 + $0x30] sm:$0xff] %v1467_v18  ;;  %v1309_v20 = vpop.f32.mrb[12].mxu1 }
 0x2e1   : > { %1496 = vst [vmem:[#allocation2 + $0x38] sm:$0xff] %v1468_v19  ;;  %v1412_v22 = vpop.f32.mrb[12].mxu0  ;;  %v1311_v24 = vpop.f32.mrb[13].mxu1 }
 0x2e2   : > { %v1413_v23 = vadd.f32 %v1412_v22, %v1309_v20  ;;  %v1414_v26 = vpop.f32.mrb[13].mxu0  ;;  %v1313_v27 = vpop.f32.mrb[14].mxu1 }
 0x2e3   : > { %v1415_v28 = vadd.f32 %v1414_v26, %v1311_v24  ;;  %v1416_v30 = vpop.f32.mrb[14].mxu0  ;;  %v1315_v31 = vpop.f32.mrb[15].mxu1 }
 0x2e4   : > { %v1469_v32 = vadd.f32 %v1413_v23, %v851_v21  ;;  %v1417_v33 = vadd.f32 %v1416_v30, %v1313_v27  ;;  %v1418_v35 = vpop.f32.mrb[15].mxu0  ;;  %v864_v21 = vld [vmem:[#allocation2 + $0xa8] sm:$0xff]  ;;  %v866_v30 = vld [vmem:[#allocation2 + $0xb8] sm:$0xff] }
 0x2e5   : > { %v1470_v36 = vadd.f32 %v1415_v28, %v852_v25  ;;  %v1419_v37 = vadd.f32 %v1418_v35, %v1315_v31  ;;  %v865_v25 = vld [vmem:[#allocation2 + $0xb0] sm:$0xff] }
 0x2e6   : > { %1497 = vst [vmem:[#allocation2 + $0x40] sm:$0xff] %v1469_v32  ;;  %v1471_v38 = vadd.f32 %v1417_v33, %v853_v29 }
 0x2e7   : > { %1498 = vst [vmem:[#allocation2 + $0x48] sm:$0xff] %v1470_v36  ;;  %v1472_v12 = vadd.f32 %v1419_v37, %v854_v34  ;;  %v867_v37 = vld [vmem:[#allocation2 + $0xc0] sm:$0xff] }
 0x2e8   : > { %1499 = vst [vmem:[#allocation2 + $0x50] sm:$0xff] %v1471_v38  ;;  %v1319_v39 = vpop.f32.mrb[16].mxu1 }
 0x2e9   : > { %1500 = vst [vmem:[#allocation2 + $0x58] sm:$0xff] %v1472_v12  ;;  %v1422_v40 = vpop.f32.mrb[16].mxu0  ;;  %v1321_v41 = vpop.f32.mrb[17].mxu1 }
 0x2ea   : > { %v1423_v42 = vadd.f32 %v1422_v40, %v1319_v39  ;;  %v1424_v44 = vpop.f32.mrb[17].mxu0  ;;  %v1323_v45 = vpop.f32.mrb[18].mxu1 }
 0x2eb   : > { %v1425_v46 = vadd.f32 %v1424_v44, %v1321_v41  ;;  %v1426_v48 = vpop.f32.mrb[18].mxu0  ;;  %v1325_v49 = vpop.f32.mrb[19].mxu1 }
 0x2ec   : > { %v1473_v50 = vadd.f32 %v1423_v42, %v855_v15  ;;  %v1427_v51 = vadd.f32 %v1426_v48, %v1323_v45  ;;  %v1428_v2 = vpop.f32.mrb[19].mxu0  ;;  %v868_v15 = vld [vmem:[#allocation2 + $0xc8] sm:$0xff]  ;;  %v870_v48 = vld [vmem:[#allocation2 + $0xd8] sm:$0xff] }
 0x2ed   : > { %v1474_v53 = vadd.f32 %v1425_v46, %v856_v43  ;;  %v1429_v54 = vadd.f32 %v1428_v2, %v1325_v49  ;;  %v869_v43 = vld [vmem:[#allocation2 + $0xd0] sm:$0xff] }
 0x2ee   : > { %1501 = vst [vmem:[#allocation2 + $0x60] sm:$0xff] %v1473_v50  ;;  %v1475_v55 = vadd.f32 %v1427_v51, %v857_v47 }
 0x2ef   : > { %1502 = vst [vmem:[#allocation2 + $0x68] sm:$0xff] %v1474_v53  ;;  %v1476_v7 = vadd.f32 %v1429_v54, %v858_v52  ;;  %v1521_v53 = vld [vmem:[#allocation2] sm:$0xff] (!%p1845_p10)  ;;  %v1522_v54 = vld [vmem:[#allocation2 + $0x8] sm:$0xff] (!%p1845_p10) }
 0x2f0   : > { %1503 = vst [vmem:[#allocation2 + $0x70] sm:$0xff] %v1475_v55  ;;  %v1329_v56 = vpop.f32.mrb[20].mxu1  ;;  %v1523_v55 = vld [vmem:[#allocation2 + $0x10] sm:$0xff] (!%p1845_p10)  ;;  %1549 = vst [vmem:[%s2960_s13] sm:$0xff] (!%p1845_p10), %v1521_v53 }
 0x2f1   : > { %1504 = vst [vmem:[#allocation2 + $0x78] sm:$0xff] %v1476_v7  ;;  %v1432_v58 = vpop.f32.mrb[20].mxu0  ;;  %v1331_v59 = vpop.f32.mrb[21].mxu1  ;;  %1550 = vst [vmem:[%s2960_s13 + $0x8] sm:$0xff] (!%p1845_p10), %v1522_v54  ;;  %v1524_v7 = vld [vmem:[#allocation2 + $0x18] sm:$0xff] (!%p1845_p10) }
 0x2f2   : > { %v1433_v60 = vadd.f32 %v1432_v58, %v1329_v56  ;;  %v1434_v62 = vpop.f32.mrb[21].mxu0  ;;  %v1333_v63 = vpop.f32.mrb[22].mxu1  ;;  %1551 = vst [vmem:[%s2960_s13 + $0x10] sm:$0xff] (!%p1845_p10), %v1523_v55  ;;  %v1525_v56 = vld [vmem:[#allocation2 + $0x20] sm:$0xff] (!%p1845_p10)  ;;  %1552 = vst [vmem:[%s2960_s13 + $0x18] sm:$0xff] (!%p1845_p10), %v1524_v7  ;;  %v1527_v58 = vld [vmem:[#allocation2 + $0x30] sm:$0xff] (!%p1845_p10) }
 0x2f3   : > { %v1435_v0 = vadd.f32 %v1434_v62, %v1331_v59  ;;  %v1436_v3 = vpop.f32.mrb[22].mxu0  ;;  %v1335_v4 = vpop.f32.mrb[23].mxu1  ;;  %1553 = vst [vmem:[%s2960_s13 + $0x20] sm:$0xff] (!%p1845_p10), %v1525_v56  ;;  %v1528_v59 = vld [vmem:[#allocation2 + $0x38] sm:$0xff] (!%p1845_p10)  ;;  %1555 = vst [vmem:[%s2960_s13 + $0x30] sm:$0xff] (!%p1845_p10), %v1527_v58  ;;  %v1531_v62 = vld [vmem:[#allocation2 + $0x50] sm:$0xff] (!%p1845_p10) }
 0x2f4   : > { %v1477_v5 = vadd.f32 %v1433_v60, %v859_v57  ;;  %v1437_v6 = vadd.f32 %v1436_v3, %v1333_v63  ;;  %v1438_v9 = vpop.f32.mrb[23].mxu0  ;;  %v1526_v57 = vld [vmem:[#allocation2 + $0x28] sm:$0xff] (!%p1845_p10)  ;;  %v1529_v60 = vld [vmem:[#allocation2 + $0x40] sm:$0xff] (!%p1845_p10)  ;;  %1556 = vst [vmem:[%s2960_s13 + $0x38] sm:$0xff] (!%p1845_p10), %v1528_v59  ;;  %v1532_v63 = vld [vmem:[#allocation2 + $0x58] sm:$0xff] (!%p1845_p10) }
 0x2f5   : > { %v1478_v10 = vadd.f32 %v1435_v0, %v860_v61  ;;  %v1439_v11 = vadd.f32 %v1438_v9, %v1335_v4  ;;  %1554 = vst [vmem:[%s2960_s13 + $0x28] sm:$0xff] (!%p1845_p10), %v1526_v57  ;;  %1557 = vst [vmem:[%s2960_s13 + $0x40] sm:$0xff] (!%p1845_p10), %v1529_v60  ;;  %v1530_v61 = vld [vmem:[#allocation2 + $0x48] sm:$0xff] (!%p1845_p10)  ;;  %v1533_v0 = vld [vmem:[#allocation2 + $0x60] sm:$0xff] (!%p1845_p10) }
 0x2f6   : > { %1505 = vst [vmem:[#allocation2 + $0x80] sm:$0xff] %v1477_v5  ;;  %v1479_v13 = vadd.f32 %v1437_v6, %v861_v1  ;;  %1558 = vst [vmem:[%s2960_s13 + $0x48] sm:$0xff] (!%p1845_p10), %v1530_v61  ;;  %v1534_v1 = vld [vmem:[#allocation2 + $0x68] sm:$0xff] (!%p1845_p10) }
 0x2f7   : > { %1506 = vst [vmem:[#allocation2 + $0x88] sm:$0xff] %v1478_v10  ;;  %v1480_v14 = vadd.f32 %v1439_v11, %v862_v8  ;;  %1559 = vst [vmem:[%s2960_s13 + $0x50] sm:$0xff] (!%p1845_p10), %v1531_v62  ;;  %v1535_v3 = vld [vmem:[#allocation2 + $0x70] sm:$0xff] (!%p1845_p10) }
 0x2f8   : > { %1507 = vst [vmem:[#allocation2 + $0x90] sm:$0xff] %v1479_v13  ;;  %v1339_v16 = vpop.f32.mrb[24].mxu1  ;;  %1560 = vst [vmem:[%s2960_s13 + $0x58] sm:$0xff] (!%p1845_p10), %v1532_v63  ;;  %v1536_v4 = vld [vmem:[#allocation2 + $0x78] sm:$0xff] (!%p1845_p10) }
 0x2f9   : > { %1508 = vst [vmem:[#allocation2 + $0x98] sm:$0xff] %v1480_v14  ;;  %v1442_v18 = vpop.f32.mrb[24].mxu0  ;;  %v1341_v19 = vpop.f32.mrb[25].mxu1  ;;  %1561 = vst [vmem:[%s2960_s13 + $0x60] sm:$0xff] (!%p1845_p10), %v1533_v0 }
 0x2fa   : > { %v1443_v20 = vadd.f32 %v1442_v18, %v1339_v16  ;;  %v1444_v22 = vpop.f32.mrb[25].mxu0  ;;  %v1343_v24 = vpop.f32.mrb[26].mxu1  ;;  %1562 = vst [vmem:[%s2960_s13 + $0x68] sm:$0xff] (!%p1845_p10), %v1534_v1  ;;  %1563 = vst [vmem:[%s2960_s13 + $0x70] sm:$0xff] (!%p1845_p10), %v1535_v3 }
 0x2fb   : > { %v1445_v23 = vadd.f32 %v1444_v22, %v1341_v19  ;;  %v1446_v26 = vpop.f32.mrb[26].mxu0  ;;  %v1345_v27 = vpop.f32.mrb[27].mxu1  ;;  %1564 = vst [vmem:[%s2960_s13 + $0x78] sm:$0xff] (!%p1845_p10), %v1536_v4 }
 0x2fc   : > { %v1481_v28 = vadd.f32 %v1443_v20, %v863_v17  ;;  %v1447_v29 = vadd.f32 %v1446_v26, %v1343_v24  ;;  %v1448_v31 = vpop.f32.mrb[27].mxu0 }
 0x2fd   : > { %v1482_v32 = vadd.f32 %v1445_v23, %v864_v21  ;;  %v1449_v33 = vadd.f32 %v1448_v31, %v1345_v27  ;;  %v1537_v5 = vld [vmem:[#allocation2 + $0x80] sm:$0xff] (!%p1845_p10) }
 0x2fe   : > { %1509 = vst [vmem:[#allocation2 + $0xa0] sm:$0xff] %v1481_v28  ;;  %v1483_v34 = vadd.f32 %v1447_v29, %v865_v25  ;;  %v1538_v6 = vld [vmem:[#allocation2 + $0x88] sm:$0xff] (!%p1845_p10)  ;;  %1565 = vst [vmem:[%s2960_s13 + $0x80] sm:$0xff] (!%p1845_p10), %v1537_v5 }
 0x2ff   : > { %1510 = vst [vmem:[#allocation2 + $0xa8] sm:$0xff] %v1482_v32  ;;  %v1484_v35 = vadd.f32 %v1449_v33, %v866_v30  ;;  %1566 = vst [vmem:[%s2960_s13 + $0x88] sm:$0xff] (!%p1845_p10), %v1538_v6  ;;  %v1539_v8 = vld [vmem:[#allocation2 + $0x90] sm:$0xff] (!%p1845_p10) }
 0x300   : > { %1511 = vst [vmem:[#allocation2 + $0xb0] sm:$0xff] %v1483_v34  ;;  %v1349_v36 = vpop.f32.mrb[28].mxu1  ;;  %v1540_v9 = vld [vmem:[#allocation2 + $0x98] sm:$0xff] (!%p1845_p10)  ;;  %1567 = vst [vmem:[%s2960_s13 + $0x90] sm:$0xff] (!%p1845_p10), %v1539_v8 }
 0x301   : > { %1512 = vst [vmem:[#allocation2 + $0xb8] sm:$0xff] %v1484_v35  ;;  %v1452_v38 = vpop.f32.mrb[28].mxu0  ;;  %v1351_v12 = vpop.f32.mrb[29].mxu1  ;;  %1568 = vst [vmem:[%s2960_s13 + $0x98] sm:$0xff] (!%p1845_p10), %v1540_v9 }
 0x302   : > { %v1453_v39 = vadd.f32 %v1452_v38, %v1349_v36  ;;  %v1454_v40 = vpop.f32.mrb[29].mxu0  ;;  %v1353_v41 = vpop.f32.mrb[30].mxu1 }
 0x303   : > { %v1455_v42 = vadd.f32 %v1454_v40, %v1351_v12  ;;  %v1456_v44 = vpop.f32.mrb[30].mxu0  ;;  %v1355_v45 = vpop.f32.mrb[31].mxu1  ;;  %1520 = sbr.rel (%p1845_p10) target bundleno = 786 (0x312), region = 68 }
 0x304   : > { %v1485_v46 = vadd.f32 %v1453_v39, %v867_v37  ;;  %v1457_v47 = vadd.f32 %v1456_v44, %v1353_v41  ;;  %v1458_v49 = vpop.f32.mrb[31].mxu0 }
 0x305   : > { %v1486_v50 = vadd.f32 %v1455_v42, %v868_v15  ;;  %v1459_v51 = vadd.f32 %v1458_v49, %v1355_v45  ;;  %v1541_v10 = vld [vmem:[#allocation2 + $0xa0] sm:$0xff] (!%p1845_p10) }
 0x306   : > { %1513 = vst [vmem:[#allocation2 + $0xc0] sm:$0xff] %v1485_v46  ;;  %v1487_v52 = vadd.f32 %v1457_v47, %v869_v43  ;;  %1569 = vst [vmem:[%s2960_s13 + $0xa0] sm:$0xff] (!%p1845_p10), %v1541_v10  ;;  %v1542_v11 = vld [vmem:[#allocation2 + $0xa8] sm:$0xff] (!%p1845_p10) }
 0x307   : > { %1514 = vst [vmem:[#allocation2 + $0xc8] sm:$0xff] %v1486_v50  ;;  %v1488_v2 = vadd.f32 %v1459_v51, %v870_v48  ;;  %v1543_v13 = vld [vmem:[#allocation2 + $0xb0] sm:$0xff] (!%p1845_p10)  ;;  %1570 = vst [vmem:[%s2960_s13 + $0xa8] sm:$0xff] (!%p1845_p10), %v1542_v11 }
 0x308   : > { %1515 = vst [vmem:[#allocation2 + $0xd0] sm:$0xff] %v1487_v52  ;;  %v1544_v14 = vld [vmem:[#allocation2 + $0xb8] sm:$0xff] (!%p1845_p10)  ;;  %1571 = vst [vmem:[%s2960_s13 + $0xb0] sm:$0xff] (!%p1845_p10), %v1543_v13 }
 0x309   : > { %1516 = vst [vmem:[#allocation2 + $0xd8] sm:$0xff] %v1488_v2  ;;  %1572 = vst [vmem:[%s2960_s13 + $0xb8] sm:$0xff] (!%p1845_p10), %v1544_v14 }
 0x30d   : > { %v1545_v16 = vld [vmem:[#allocation2 + $0xc0] sm:$0xff] }
 0x30e   : > { %v1546_v17 = vld [vmem:[#allocation2 + $0xc8] sm:$0xff]  ;;  %1573 = vst [vmem:[%s2960_s13 + $0xc0] sm:$0xff] %v1545_v16 }
 0x30f   : > { %v1547_v18 = vld [vmem:[#allocation2 + $0xd0] sm:$0xff]  ;;  %1574 = vst [vmem:[%s2960_s13 + $0xc8] sm:$0xff] %v1546_v17 }
 0x310   : > { %1575 = vst [vmem:[%s2960_s13 + $0xd0] sm:$0xff] %v1547_v18  ;;  %v1548_v19 = vld [vmem:[#allocation2 + $0xd8] sm:$0xff] }
 0x311   : > { %1576 = vst [vmem:[%s2960_s13 + $0xd8] sm:$0xff] %v1548_v19 }
 0x312 PF: > { %s3343_s15 = sld [smem:[#allocation22_spill]]  ;;  %s1592_s23 = sshll.u32 %s2960_s13, 4  ;;  %s3177_s23 = int_to_ptr.vmem [resolvable:$true] %s1592_s23 }
 0x313   : > { %s3344_s20 = sld [smem:[#allocation35_spill]]  ;;  %s3181_s5 = scalar_lea.sflag [#allocation5], %s383_s12 }
 0x314   : > { %s2367_s10 = scalar_lea.vmem %s3177_s23, 3584  ;;  %p3346_p3 = scmp.ne.s32.totalorder %s3326_s21, 0 }
 0x315   : > { %p2368_p9 = scmp.ne.s32.totalorder %s3177_s23, %s2367_s10  ;;  %s2539_s4 = smov [#allocation12]  }
 0x316   : > { %s2371_s9 = sshll.u32 %s2539_s4, 4  ;;  %s2372_s9 = int_to_ptr.vmem [resolvable:$false] %s2371_s9 }
 0x317   : > { %p2369_p8 = pnand %p2368_p9, %p3346_p3  ;;  %s2373_s26 = scalar_lea.vmem %s2372_s9, 7168 }
 0x318   : > { %s1856_s14 = smul.u32 3584, %s3343_s15  ;;  %p2374_p5 = scmp.lt.s32.totalorder %s3177_s23, %s2372_s9 }
 0x319   : > { %s3345_s7 = smov %s3344_s20  ;;  %p2370_p13 = pneg %p2369_p8 }
 0x31a   : > { %s3175_s16 = scalar_lea.hbm %s3344_s20, %s1856_s14  ;;  %p2375_p12 = scmp.lt.s32.totalorder %s2373_s26, %s2367_s10 }
 0x31c   : > { %p2376_p11 = por %p2375_p12, %p2374_p5 }
 0x31e   : > { %p2377_p6 = pnand %p2376_p11, %p2370_p13 }
 0x320   : > { %2380 = shalt.err (!%p2377_p6)
}
 0x321   : > { %s2381_s17 = scalar_lea.hbm %s3175_s16, 3584  ;;  %s2385_s27 = scalar_lea.hbm %s3345_s7, 7168 }
 0x322   : > { %p2382_p2 = scmp.ne.s32.totalorder %s3175_s16, %s2381_s17  ;;  %p2386_p7 = scmp.lt.u32.totalorder %s3175_s16, %s3345_s7 }
 0x323   : > { %p2387_p4 = scmp.lt.u32.totalorder %s2385_s27, %s2381_s17  ;;  %p2389_p9 = scmp.lt.u32.totalorder %s2381_s17, %s3175_s16 }
 0x324   : > { %p2383_p1 = pnand %p2382_p2, %p3346_p3 }
 0x325   : > { %p2388_p10 = por %p2387_p4, %p2386_p7 }
 0x326   : > { %p2384_p0 = pneg %p2383_p1 }
 0x327   : > { %p2390_p8 = por %p2389_p9, %p2388_p10 }
 0x329   : > { %p2391_p13 = pnand %p2390_p8, %p2384_p0 }
 0x32b   : > { %2394 = shalt.err (!%p2391_p13)
}
 0x32c   : > { %s2540_s8 = smov 256   ;;  %s2541_s15 = smov 16  }
 0x32d   : > { %1939 = dma.vmem_to_hbm [thread:$0]  (%p3346_p3), %s3177_s23, 3584, %s3175_s16, %s3181_s5, %s2540_s8, %s2540_s8, %s2541_s15  }
 0x32e PF: > { %p1966_p5 = scmp.ge.s32.totalorder %s2525_s6, 2  ;;  %s1607_s14 = sand.u32 1, %s2473_s18  }
 0x32f   : > { %p3347_p12 = scmp.ne.s32.totalorder %s3327_s24, 0  ;;  %s1608_s3 = scalar_lea.sflag [#allocation5], %s1607_s14 }
 0x331   : > { %p1959_p11 = pnand %p1966_p5, %p3347_p12 }
 0x333   : > { %2468 = dma.done.wait (!%p1959_p11), %s1608_s3, 3584  }
 0x334   : > { %2470 = vsyncadd (!%p1959_p11), %s1608_s3, 4294963712  ;;  %s25_s6 = sadd.s32 1, %s2525_s6   ;;  %s3349_s21 = sld [smem:[#allocation18_spill]] }
 0x335   : > { %p3210_p6 = scmp.ge.s32.totalorder %s25_s6, 8   ;;  %s3350_s20 = sld [smem:[#allocation31_spill]] }
 0x336   : > { %s3351_s23 = sld [smem:[#allocation19_spill]]  ;;  %s3352_s16 = sld [smem:[#allocation30_spill]] }
 0x337   : > { %s3353_s5 = sld [smem:[#allocation20_spill]]  ;;  %s3354_s26 = sld [smem:[#allocation25_spill]] }
 0x338   : > { %s3355_s28 = sld [smem:[#allocation23_spill]]  ;;  %s3356_s10 = sld [smem:[#allocation24_spill]] }
 0x339   : > { %s3357_s30 = sld [smem:[#allocation29_spill]]  ;;  %s3358_s18 = smov %s2477_s19 }
 0x33a   : > { %s3359_s19 = smov %s3349_s21  ;;  %s3360_s21 = smov %s2489_s22 }
 0x33b   : > { %s3363_s24 = smov %s2501_s25  ;;  %s3365_s27 = smov %s2517_s29 }
 0x33c   : > { %s3361_s22 = smov %s3351_s23  ;;  %s3362_s23 = smov %s3352_s16 }
 0x33d   : > { %s3364_s25 = smov %s3353_s5  ;;  %24 = sbr.rel (!%p3210_p6) target bundleno = 18 (0x12), region = 133 }
 0x33e   : > { %s3366_s29 = smov %s3356_s10 }
 0x344   :  { %1613 = vsyncpa [#allocation4], 1 }
 0x345   :  { %1615 = vsyncpa [#allocation4 + $0x1], 1 }
 0x346   :  { %1616 = vsyncpa [#allocation7], 1 }
 0x347   :  { %1618 = vsyncpa [#allocation7 + $0x1], 1 }
 0x348   :  { %1619 = vsyncpa [#allocation10], 1 }
 0x349   :  { %1621 = vsyncpa [#allocation10 + $0x1], 1 }
 0x34a   :  { %1622 = vsyncpa [#allocation5], 1 }
 0x34b   :  { %1624 = vsyncpa [#allocation5 + $0x1], 1 }

</bundles_post_ra>
